<compile_context>
chip_gen: v5e
topology: v5e:2x2
jax: 0.10.0
libtpu: 0.0.40
codegen_flags: <defaults>
</compile_context>

<pallas_src>
import functools
import math

import jax
import jax.numpy as jnp
from jax.experimental import pallas as pl
from jax.experimental.pallas import tpu as pltpu

# Module constants implied by the PyTorch spec (Conv1d(1->16,k5), Conv1d(16->32,k5)).
_K, _C1, _C2 = 5, 16, 32


def _round_up(v, m):
    return (v + m - 1) // m * m


def _slab_layout(K, C1, C2, d):
    """Static row offsets of every weight/bias inside the packed parameter slab."""
    lay = {}
    lay['w1'] = 0                      # rows [0, K): conv1 taps, C1 lanes
    lay['b1'] = K
    lay['b2'] = K + 1
    lay['pos'] = K + 2                 # pos_enc[0] (seq_len == x.size(1) == 1 quirk)
    r = _round_up(K + 3, 8)
    lay['w2'] = r; r += K * C1         # conv2 im2col weight (K*C1, C2)
    r = _round_up(r, 8)
    lay['wqkv'] = r; r += d            # fused QKV (d, 3d), head-major, q pre-scaled
    lay['bqkv'] = r
    lay['bo'] = r + 1
    lay['bg'] = r + 2
    r = _round_up(r + 3, 8)
    lay['wo'] = r; r += d              # out_proj (d, d)
    r = _round_up(r, 8)
    lay['wg'] = r; r += 2 * d          # gate (2d, 2d)
    lay['rows'] = _round_up(r, 8)
    lay['cols'] = _round_up(max(3 * d, 2 * d, C1, C2, 128), 128)
    return lay


# ----------------------------------------------------------------------------
# Fused kernel: CNN branch + attention branch + gate, whole (tiny) batch.
# ----------------------------------------------------------------------------
def cnn_attention_gate_kernel(num_heads, K, C1, C2, lay,
                              x_ref, slab_ref, out_ref, col2_ref):
    B, L, _ = x_ref.shape
    d = out_ref.shape[-1] // 2
    dh = d // num_heads
    pad = (K - 1) // 2
    L2 = L // 2

    x3 = x_ref[...]                                                    # (B, L, 1)

    # ------------------------- CNN branch -------------------------
    # conv1: K shifted multiply-accumulates, output channels lane-dense.
    w1 = slab_ref[lay['w1']:lay['w1'] + K, 0:C1]                       # (K, C1)
    b1 = slab_ref[lay['b1']:lay['b1'] + 1, 0:C1]                       # (1, C1)
    zp = jnp.zeros((B, pad, 1), jnp.float32)
    xp = jnp.concatenate([zp, x3, zp], axis=1)                         # (B, L+2p, 1)
    acc1 = xp[:, 0:L, :] * w1[0:1, :]
    for k in range(1, K):
        acc1 = acc1 + xp[:, k:k + L, :] * w1[k:k + 1, :]
    c1 = jnp.maximum(acc1 + b1, 0.0)                                   # (B, L, C1)
    c1 = c1.reshape(B, L2, 2, C1)
    p1 = jnp.maximum(c1[:, :, 0, :], c1[:, :, 1, :])                   # (B, L2, C1)  MaxPool1d(2)

    # conv2: build the im2col slab in VMEM scratch with static-offset stores,
    # then one MXU matmul (B*L2, K*C1) @ (K*C1, C2).
    w2 = slab_ref[lay['w2']:lay['w2'] + K * C1, 0:C2]                  # (K*C1, C2)
    b2 = slab_ref[lay['b2']:lay['b2'] + 1, 0:C2]                       # (1, C2)
    col2_ref[...] = jnp.zeros((B, L2, K * C1), jnp.float32)
    for k in range(K):
        lo = max(0, pad - k)
        hi = min(L2, L2 + pad - k)
        col2_ref[:, lo:hi, k * C1:(k + 1) * C1] = p1[:, lo + k - pad:hi + k - pad, :]
    c2 = jnp.dot(col2_ref[...].reshape(B * L2, K * C1), w2,
                 preferred_element_type=jnp.float32) + b2              # (B*L2, C2)
    c2 = jnp.maximum(c2, 0.0)
    c2 = c2.reshape(B, L2 // 2, 2, C2)
    p2 = jnp.maximum(c2[:, :, 0, :], c2[:, :, 1, :])                   # (B, L2/2, C2)
    cnn_mean = jnp.mean(p2, axis=1)                                    # (B, C2)

    # ----------------------- Attention branch -----------------------
    pos0 = slab_ref[lay['pos']:lay['pos'] + 1, 0:d]                    # (1, d)  = pos_enc[:1]
    wqkv = slab_ref[lay['wqkv']:lay['wqkv'] + d, 0:3 * d]              # (d, 3d) head-major, q scaled
    bqkv = slab_ref[lay['bqkv']:lay['bqkv'] + 1, 0:3 * d]              # (1, 3d)
    wo = slab_ref[lay['wo']:lay['wo'] + d, 0:d]                        # (d, d)
    bo = slab_ref[lay['bo']:lay['bo'] + 1, 0:d]                        # (1, d)

    xseq = (x3 + pos0).reshape(B * L, d)                               # (B*L, d)
    qkv = jnp.dot(xseq, wqkv, preferred_element_type=jnp.float32) + bqkv   # (B*L, 3d), one matmul
    qkv3 = qkv.reshape(B, L, 3 * d)

    # Stack heads into the batch dim (z = h*B + b); columns are already grouped per head.
    hsz = 3 * dh
    qkv_hm = jnp.concatenate(
        [qkv3[:, :, h * hsz:(h + 1) * hsz] for h in range(num_heads)], axis=0)   # (nh*B, L, 3dh)
    qh = qkv_hm[:, :, 0:dh]                                            # pre-scaled by 1/sqrt(dh)
    kh = qkv_hm[:, :, dh:2 * dh]
    vh = qkv_hm[:, :, 2 * dh:3 * dh]

    s = jnp.einsum('zqd,zkd->zqk', qh, kh, preferred_element_type=jnp.float32)   # (nh*B, L, L)
    m = jnp.max(s, axis=-1, keepdims=True)
    e = jnp.exp(s - m)
    p = e * pl.reciprocal(jnp.sum(e, axis=-1, keepdims=True), approx=True)

    # Mean over queries commutes past the PV matmul and out_proj (both linear).
    pbar = jnp.mean(p, axis=1, keepdims=True)                          # (nh*B, 1, L)
    ctx = jnp.einsum('zqk,zkd->zqd', pbar, vh,
                     preferred_element_type=jnp.float32)               # (nh*B, 1, dh)
    ctx = ctx.reshape(num_heads, B, dh)
    ctx_mean = jnp.concatenate([ctx[h] for h in range(num_heads)], axis=-1)       # (B, d)
    attn_mean = jnp.dot(ctx_mean, wo, preferred_element_type=jnp.float32) + bo    # (B, d)

    # ---------------------------- Gate ----------------------------
    wg = slab_ref[lay['wg']:lay['wg'] + 2 * d, 0:2 * d]                # (2d, 2d)
    bg = slab_ref[lay['bg']:lay['bg'] + 1, 0:2 * d]                    # (1, 2d)
    combined = jnp.concatenate([cnn_mean, attn_mean], axis=-1)         # (B, 2d)
    z = jnp.dot(combined, wg, preferred_element_type=jnp.float32) + bg
    gate = 0.5 * (jnp.tanh(0.5 * z) + 1.0)                             # sigmoid via tanh (EUP)
    out_ref[...] = combined * gate


# ----------------------------------------------------------------------------
# One-time parameter packing (all re-layouts hoisted out of the forward path).
# ----------------------------------------------------------------------------
def pack_params(params, num_heads):
    d = params['out_proj_w'].shape[0]
    C1, _, K = params['w1'].shape
    C2 = params['w2'].shape[0]
    assert C2 == d, "module requires d_model == 32 (gate input = cat(32, d_model) = 2*d_model)"
    dh = d // num_heads
    lay = _slab_layout(K, C1, C2, d)
    scale = 1.0 / math.sqrt(dh)

    slab = jnp.zeros((lay['rows'], lay['cols']), jnp.float32)
    # conv1: taps as rows, out-channels in lanes.
    slab = slab.at[lay['w1']:lay['w1'] + K, 0:C1].set(
        jnp.transpose(params['w1'][:, 0, :], (1, 0)))
    slab = slab.at[lay['b1'], 0:C1].set(params['b1'])
    slab = slab.at[lay['b2'], 0:C2].set(params['b2'])
    slab = slab.at[lay['pos'], 0:d].set(params['pos_enc'][0, :])
    # conv2 im2col weight: row index = k*C1 + c_in.
    slab = slab.at[lay['w2']:lay['w2'] + K * C1, 0:C2].set(
        jnp.transpose(params['w2'], (2, 1, 0)).reshape(K * C1, C2))
    # Fused QKV: columns regrouped head-major [q_h | k_h | v_h], q (and its bias) pre-scaled.
    wqkv_t = jnp.transpose(params['in_proj_w'], (1, 0))                # (d, 3d)
    bqkv = params['in_proj_b']
    wcols, bcols = [], []
    for h in range(num_heads):
        sl = slice(h * dh, (h + 1) * dh)
        wcols += [wqkv_t[:, 0:d][:, sl] * scale,
                  wqkv_t[:, d:2 * d][:, sl],
                  wqkv_t[:, 2 * d:3 * d][:, sl]]
        bcols += [bqkv[0:d][sl] * scale, bqkv[d:2 * d][sl], bqkv[2 * d:3 * d][sl]]
    slab = slab.at[lay['wqkv']:lay['wqkv'] + d, 0:3 * d].set(jnp.concatenate(wcols, axis=1))
    slab = slab.at[lay['bqkv'], 0:3 * d].set(jnp.concatenate(bcols))
    slab = slab.at[lay['bo'], 0:d].set(params['out_proj_b'])
    slab = slab.at[lay['bg'], 0:2 * d].set(params['gate_b'])
    slab = slab.at[lay['wo']:lay['wo'] + d, 0:d].set(jnp.transpose(params['out_proj_w'], (1, 0)))
    slab = slab.at[lay['wg']:lay['wg'] + 2 * d, 0:2 * d].set(jnp.transpose(params['gate_w'], (1, 0)))
    return slab


# ----------------------------------------------------------------------------
# Forward: a single pallas_call on (x, packed slab).
# ----------------------------------------------------------------------------
@functools.partial(jax.jit, static_argnames=("d_model", "num_heads"))
def cnn_attention_gate_forward(x, slab, *, d_model, num_heads):
    """x: (B, 1, L) — the NCL input the PyTorch module's Conv1d expects."""
    B, c_in, L = x.shape
    assert c_in == 1, "Conv1d(in_channels=1, ...)"
    assert d_model == _C2
    lay = _slab_layout(_K, _C1, _C2, d_model)
    x3 = x.astype(jnp.float32).reshape(B, L, 1)    # channel dim is 1 -> pure relabel

    kernel = functools.partial(cnn_attention_gate_kernel, num_heads, _K, _C1, _C2, lay)
    return pl.pallas_call(
        kernel,
        out_shape=jax.ShapeDtypeStruct((B, 2 * d_model), jnp.float32),
        grid=(1,),
        in_specs=[
            pl.BlockSpec((B, L, 1), lambda i: (0, 0, 0)),
            pl.BlockSpec((lay['rows'], lay['cols']), lambda i: (0, 0)),
        ],
        out_specs=pl.BlockSpec((B, 2 * d_model), lambda i: (0, 0)),
        scratch_shapes=[pltpu.VMEM((B, L // 2, _K * _C1), jnp.float32)],
        compiler_params=pltpu.CompilerParams(dimension_semantics=("arbitrary",)),
    )(x3, slab)


# ----------------------------------------------------------------------------
# Parameters (deterministic; shapes match the PyTorch module).
# ----------------------------------------------------------------------------
def sinusoidal_pos_enc(d_model, max_len=5000):
    position = jnp.arange(max_len, dtype=jnp.float32)[:, None]
    div_term = jnp.exp(jnp.arange(0, d_model, 2, dtype=jnp.float32)
                       * (-math.log(10000.0) / d_model))
    pe = jnp.zeros((max_len, d_model), jnp.float32)
    pe = pe.at[:, 0::2].set(jnp.sin(position * div_term))
    pe = pe.at[:, 1::2].set(jnp.cos(position * div_term))
    return pe


def init_params(key, d_model):
    def u(k, shape, fan_in):
        s = 1.0 / math.sqrt(fan_in)
        return jax.random.uniform(k, shape, jnp.float32, -s, s)
    ks = jax.random.split(key, 10)
    return {
        'w1': u(ks[0], (16, 1, 5), 1 * 5),
        'b1': u(ks[1], (16,), 1 * 5),
        'w2': u(ks[2], (32, 16, 5), 16 * 5),
        'b2': u(ks[3], (32,), 16 * 5),
        'in_proj_w': u(ks[4], (3 * d_model, d_model), d_model),
        'in_proj_b': u(ks[5], (3 * d_model,), d_model),
        'out_proj_w': u(ks[6], (d_model, d_model), d_model),
        'out_proj_b': u(ks[7], (d_model,), d_model),
        'gate_w': u(ks[8], (2 * d_model, 2 * d_model), 2 * d_model),
        'gate_b': u(ks[9], (2 * d_model,), 2 * d_model),
        'pos_enc': sinusoidal_pos_enc(d_model),
    }


# ----------------------------------------------------------------------------
# Pure-JAX reference (mirrors the PyTorch forward, including the seq_len=x.size(1) quirk).
# ----------------------------------------------------------------------------
def reference_forward(x, params, num_heads):
    B, c_in, L = x.shape
    d = params['out_proj_w'].shape[0]
    nh, dh = num_heads, d // num_heads

    def conv_block(inp, w, b):
        y = jax.lax.conv_general_dilated(
            inp, w, window_strides=(1,), padding=[(2, 2)],
            dimension_numbers=('NCH', 'OIH', 'NCH'))
        y = jax.nn.relu(y + b[None, :, None])
        return jnp.maximum(y[:, :, 0::2], y[:, :, 1::2])      # MaxPool1d(2)

    y = conv_block(x.astype(jnp.float32), params['w1'], params['b1'])
    y = conv_block(y, params['w2'], params['b2'])
    cnn_mean = jnp.mean(jnp.transpose(y, (0, 2, 1)), axis=1)   # (B, 32)

    seq_len = c_in                                             # x.size(1)
    xs = jnp.transpose(x, (0, 2, 1)).astype(jnp.float32)       # (B, L, 1)
    xs = xs + params['pos_enc'][:seq_len, :]                   # (B, L, d)
    qkv = xs @ params['in_proj_w'].T + params['in_proj_b']
    q, k, v = qkv[..., :d], qkv[..., d:2 * d], qkv[..., 2 * d:]
    qh = q.reshape(B, L, nh, dh).transpose(0, 2, 1, 3)
    kh = k.reshape(B, L, nh, dh).transpose(0, 2, 1, 3)
    vh = v.reshape(B, L, nh, dh).transpose(0, 2, 1, 3)
    s = jnp.einsum('bhqd,bhkd->bhqk', qh, kh) / math.sqrt(dh)
    p = jax.nn.softmax(s, axis=-1)
    ctx = jnp.einsum('bhqk,bhkd->bhqd', p, vh).transpose(0, 2, 1, 3).reshape(B, L, d)
    attn = ctx @ params['out_proj_w'].T + params['out_proj_b']
    attn_mean = jnp.mean(attn, axis=1)

    combined = jnp.concatenate([cnn_mean, attn_mean], axis=1)
    gate = jax.nn.sigmoid(combined @ params['gate_w'].T + params['gate_b'])
    return combined * gate


if __name__ == "__main__":
    batch = 2
    in_channels = 1      # Conv1d(in_channels=1, ...) in the module
    length = 16          # spatial length; pooled twice -> 4
    d_model = 32         # gate expects cat(cnn(32), attn(d_model)) == 2*d_model
    num_heads = 4

    key = jax.random.PRNGKey(0)
    key, kx = jax.random.split(key)
    x = jax.random.normal(kx, (batch, in_channels, length), jnp.float32)
    params = init_params(key, d_model)

    # One-time packing (hoisted out of the per-call forward path).
    slab = jax.block_until_ready(pack_params(params, num_heads))

    out = cnn_attention_gate_forward(x, slab, d_model=d_model, num_heads=num_heads)
    out = jax.block_until_ready(out)

    ref = reference_forward(x, params, num_heads)
    assert out.shape == (batch, 2 * d_model)
    err = jnp.max(jnp.abs(out - ref))
    assert jnp.allclose(out, ref, atol=1e-3, rtol=1e-3), f"mismatch: max err {err}"

    print("KERNEL_OK")
</pallas_src>

<mosaic_0001>
module attributes {stable_mosaic.version = 11 : i64} {
  func.func @cnn_attention_gate_kernel(%arg0: i32, %arg1: memref<2x16x1xf32, #tpu.memory_space<vmem>>, %arg2: memref<224x128xf32, #tpu.memory_space<vmem>>, %arg3: memref<2x64xf32, #tpu.memory_space<vmem>>, %arg4: memref<2x8x80xf32, #tpu.memory_space<vmem>>) attributes {dimension_semantics = [#tpu.dimension_semantics<arbitrary>], iteration_bounds = array<i64: 1>, scalar_prefetch = 0 : i64, scratch_operands = 1 : i64, tpu.core_type = #tpu.core_type<tc>, window_params = [{pipeline_mode = #tpu.pipeline_mode<synchronous>, transform_indices = @transform_0, window_bounds = array<i64: 2, 16, 1>}, {pipeline_mode = #tpu.pipeline_mode<synchronous>, transform_indices = @transform_1, window_bounds = array<i64: 224, 128>}, {pipeline_mode = #tpu.pipeline_mode<synchronous>, transform_indices = @transform_2, window_bounds = array<i64: 2, 64>}]} {
    %c0 = arith.constant 0 : index
    %c0_0 = arith.constant 0 : index
    %c0_1 = arith.constant 0 : index
    %0 = vector.load %arg1[%c0, %c0_0, %c0_1] : memref<2x16x1xf32, #tpu.memory_space<vmem>>, vector<2x16x1xf32>
    %c0_2 = arith.constant 0 : index
    %c0_3 = arith.constant 0 : index
    %1 = vector.load %arg2[%c0_2, %c0_3] : memref<224x128xf32, #tpu.memory_space<vmem>>, vector<5x16xf32>
    %c5 = arith.constant 5 : index
    %c0_4 = arith.constant 0 : index
    %2 = vector.load %arg2[%c5, %c0_4] : memref<224x128xf32, #tpu.memory_space<vmem>>, vector<1x16xf32>
    %cst = arith.constant 0.000000e+00 : f32
    %3 = vector.broadcast %cst : f32 to vector<2x2x1xf32>
    %4 = tpu.concatenate %3, %0, %3 in 1 : vector<2x2x1xf32>, vector<2x16x1xf32>, vector<2x2x1xf32> -> vector<2x20x1xf32>
    %5 = vector.extract_strided_slice %4 {offsets = [0, 0, 0], sizes = [2, 16, 1], strides = [1, 1, 1]} : vector<2x20x1xf32> to vector<2x16x1xf32>
    %6 = vector.extract_strided_slice %1 {offsets = [0, 0], sizes = [1, 16], strides = [1, 1]} : vector<5x16xf32> to vector<1x16xf32>
    %7 = vector.shape_cast %6 : vector<1x16xf32> to vector<1x1x16xf32>
    %8 = vector.broadcast %5 : vector<2x16x1xf32> to vector<2x16x16xf32>
    %9 = vector.broadcast %7 : vector<1x1x16xf32> to vector<2x16x16xf32>
    %10 = arith.mulf %8, %9 : vector<2x16x16xf32>
    %11 = vector.extract_strided_slice %4 {offsets = [0, 1, 0], sizes = [2, 16, 1], strides = [1, 1, 1]} : vector<2x20x1xf32> to vector<2x16x1xf32>
    %12 = vector.extract_strided_slice %1 {offsets = [1, 0], sizes = [1, 16], strides = [1, 1]} : vector<5x16xf32> to vector<1x16xf32>
    %13 = vector.shape_cast %12 : vector<1x16xf32> to vector<1x1x16xf32>
    %14 = vector.broadcast %11 : vector<2x16x1xf32> to vector<2x16x16xf32>
    %15 = vector.broadcast %13 : vector<1x1x16xf32> to vector<2x16x16xf32>
    %16 = arith.mulf %14, %15 : vector<2x16x16xf32>
    %17 = arith.addf %10, %16 : vector<2x16x16xf32>
    %18 = vector.extract_strided_slice %4 {offsets = [0, 2, 0], sizes = [2, 16, 1], strides = [1, 1, 1]} : vector<2x20x1xf32> to vector<2x16x1xf32>
    %19 = vector.extract_strided_slice %1 {offsets = [2, 0], sizes = [1, 16], strides = [1, 1]} : vector<5x16xf32> to vector<1x16xf32>
    %20 = vector.shape_cast %19 : vector<1x16xf32> to vector<1x1x16xf32>
    %21 = vector.broadcast %18 : vector<2x16x1xf32> to vector<2x16x16xf32>
    %22 = vector.broadcast %20 : vector<1x1x16xf32> to vector<2x16x16xf32>
    %23 = arith.mulf %21, %22 : vector<2x16x16xf32>
    %24 = arith.addf %17, %23 : vector<2x16x16xf32>
    %25 = vector.extract_strided_slice %4 {offsets = [0, 3, 0], sizes = [2, 16, 1], strides = [1, 1, 1]} : vector<2x20x1xf32> to vector<2x16x1xf32>
    %26 = vector.extract_strided_slice %1 {offsets = [3, 0], sizes = [1, 16], strides = [1, 1]} : vector<5x16xf32> to vector<1x16xf32>
    %27 = vector.shape_cast %26 : vector<1x16xf32> to vector<1x1x16xf32>
    %28 = vector.broadcast %25 : vector<2x16x1xf32> to vector<2x16x16xf32>
    %29 = vector.broadcast %27 : vector<1x1x16xf32> to vector<2x16x16xf32>
    %30 = arith.mulf %28, %29 : vector<2x16x16xf32>
    %31 = arith.addf %24, %30 : vector<2x16x16xf32>
    %32 = vector.extract_strided_slice %4 {offsets = [0, 4, 0], sizes = [2, 16, 1], strides = [1, 1, 1]} : vector<2x20x1xf32> to vector<2x16x1xf32>
    %33 = vector.extract_strided_slice %1 {offsets = [4, 0], sizes = [1, 16], strides = [1, 1]} : vector<5x16xf32> to vector<1x16xf32>
    %34 = vector.shape_cast %33 : vector<1x16xf32> to vector<1x1x16xf32>
    %35 = vector.broadcast %32 : vector<2x16x1xf32> to vector<2x16x16xf32>
    %36 = vector.broadcast %34 : vector<1x1x16xf32> to vector<2x16x16xf32>
    %37 = arith.mulf %35, %36 : vector<2x16x16xf32>
    %38 = arith.addf %31, %37 : vector<2x16x16xf32>
    %39 = vector.shape_cast %2 : vector<1x16xf32> to vector<1x1x16xf32>
    %40 = vector.broadcast %39 : vector<1x1x16xf32> to vector<2x16x16xf32>
    %41 = arith.addf %38, %40 : vector<2x16x16xf32>
    %cst_5 = arith.constant 0.000000e+00 : f32
    %42 = vector.broadcast %cst_5 : f32 to vector<2x16x16xf32>
    %43 = arith.maximumf %41, %42 : vector<2x16x16xf32>
    %44 = vector.shape_cast %43 : vector<2x16x16xf32> to vector<2x8x2x16xf32>
    %45 = vector.extract_strided_slice %44 {offsets = [0, 0, 0, 0], sizes = [2, 8, 1, 16], strides = [1, 1, 1, 1]} : vector<2x8x2x16xf32> to vector<2x8x1x16xf32>
    %46 = vector.shape_cast %45 : vector<2x8x1x16xf32> to vector<2x8x16xf32>
    %47 = vector.extract_strided_slice %44 {offsets = [0, 0, 1, 0], sizes = [2, 8, 1, 16], strides = [1, 1, 1, 1]} : vector<2x8x2x16xf32> to vector<2x8x1x16xf32>
    %48 = vector.shape_cast %47 : vector<2x8x1x16xf32> to vector<2x8x16xf32>
    %49 = arith.maximumf %46, %48 : vector<2x8x16xf32>
    %c8 = arith.constant 8 : index
    %c0_6 = arith.constant 0 : index
    %50 = vector.load %arg2[%c8, %c0_6] : memref<224x128xf32, #tpu.memory_space<vmem>>, vector<80x32xf32>
    %c6 = arith.constant 6 : index
    %c0_7 = arith.constant 0 : index
    %51 = vector.load %arg2[%c6, %c0_7] : memref<224x128xf32, #tpu.memory_space<vmem>>, vector<1x32xf32>
    %cst_8 = arith.constant 0.000000e+00 : f32
    %52 = vector.broadcast %cst_8 : f32 to vector<2x8x80xf32>
    %c0_9 = arith.constant 0 : index
    %c0_10 = arith.constant 0 : index
    %c0_11 = arith.constant 0 : index
    %53 = vector.load %arg4[%c0_9, %c0_10, %c0_11] : memref<2x8x80xf32, #tpu.memory_space<vmem>>, vector<2x8x80xf32>
    tpu.vector_store %arg4[%c0_9, %c0_10, %c0_11], %52 {strides = array<i32>} : memref<2x8x80xf32, #tpu.memory_space<vmem>>, vector<2x8x80xf32>,
    %54 = vector.extract_strided_slice %49 {offsets = [0, 0, 0], sizes = [2, 6, 16], strides = [1, 1, 1]} : vector<2x8x16xf32> to vector<2x6x16xf32>
    %c0_12 = arith.constant 0 : index
    %c2 = arith.constant 2 : index
    %c0_13 = arith.constant 0 : index
    %55 = vector.load %arg4[%c0_12, %c2, %c0_13] : memref<2x8x80xf32, #tpu.memory_space<vmem>>, vector<2x6x16xf32>
    tpu.vector_store %arg4[%c0_12, %c2, %c0_13], %54 {strides = array<i32>} : memref<2x8x80xf32, #tpu.memory_space<vmem>>, vector<2x6x16xf32>,
    %56 = vector.extract_strided_slice %49 {offsets = [0, 0, 0], sizes = [2, 7, 16], strides = [1, 1, 1]} : vector<2x8x16xf32> to vector<2x7x16xf32>
    %c0_14 = arith.constant 0 : index
    %c1 = arith.constant 1 : index
    %c16 = arith.constant 16 : index
    %57 = vector.load %arg4[%c0_14, %c1, %c16] : memref<2x8x80xf32, #tpu.memory_space<vmem>>, vector<2x7x16xf32>
    tpu.vector_store %arg4[%c0_14, %c1, %c16], %56 {strides = array<i32>} : memref<2x8x80xf32, #tpu.memory_space<vmem>>, vector<2x7x16xf32>,
    %c0_15 = arith.constant 0 : index
    %c0_16 = arith.constant 0 : index
    %c32 = arith.constant 32 : index
    %58 = vector.load %arg4[%c0_15, %c0_16, %c32] : memref<2x8x80xf32, #tpu.memory_space<vmem>>, vector<2x8x16xf32>
    tpu.vector_store %arg4[%c0_15, %c0_16, %c32], %49 {strides = array<i32>} : memref<2x8x80xf32, #tpu.memory_space<vmem>>, vector<2x8x16xf32>,
    %59 = vector.extract_strided_slice %49 {offsets = [0, 1, 0], sizes = [2, 7, 16], strides = [1, 1, 1]} : vector<2x8x16xf32> to vector<2x7x16xf32>
    %c0_17 = arith.constant 0 : index
    %c0_18 = arith.constant 0 : index
    %c48 = arith.constant 48 : index
    %60 = vector.load %arg4[%c0_17, %c0_18, %c48] : memref<2x8x80xf32, #tpu.memory_space<vmem>>, vector<2x7x16xf32>
    tpu.vector_store %arg4[%c0_17, %c0_18, %c48], %59 {strides = array<i32>} : memref<2x8x80xf32, #tpu.memory_space<vmem>>, vector<2x7x16xf32>,
    %61 = vector.extract_strided_slice %49 {offsets = [0, 2, 0], sizes = [2, 6, 16], strides = [1, 1, 1]} : vector<2x8x16xf32> to vector<2x6x16xf32>
    %c0_19 = arith.constant 0 : index
    %c0_20 = arith.constant 0 : index
    %c64 = arith.constant 64 : index
    %62 = vector.load %arg4[%c0_19, %c0_20, %c64] : memref<2x8x80xf32, #tpu.memory_space<vmem>>, vector<2x6x16xf32>
    tpu.vector_store %arg4[%c0_19, %c0_20, %c64], %61 {strides = array<i32>} : memref<2x8x80xf32, #tpu.memory_space<vmem>>, vector<2x6x16xf32>,
    %c0_21 = arith.constant 0 : index
    %c0_22 = arith.constant 0 : index
    %c0_23 = arith.constant 0 : index
    %63 = vector.load %arg4[%c0_21, %c0_22, %c0_23] : memref<2x8x80xf32, #tpu.memory_space<vmem>>, vector<2x8x80xf32>
    %64 = vector.shape_cast %63 : vector<2x8x80xf32> to vector<16x80xf32>
    %cst_24 = arith.constant dense<0.000000e+00> : vector<16x32xf32>
    %65 = tpu.matmul %64, %50, %cst_24 {dimension_numbers = #tpu.dot_dimension_numbers<[1], [0], [0], [1], [0, 0, 1, 1], [], []>} : vector<16x80xf32>, vector<80x32xf32>, vector<16x32xf32> -> vector<16x32xf32>
    %66 = vector.broadcast %51 : vector<1x32xf32> to vector<16x32xf32>
    %67 = arith.addf %65, %66 : vector<16x32xf32>
    %cst_25 = arith.constant 0.000000e+00 : f32
    %68 = vector.broadcast %cst_25 : f32 to vector<16x32xf32>
    %69 = arith.maximumf %67, %68 : vector<16x32xf32>
    %70 = vector.shape_cast %69 : vector<16x32xf32> to vector<2x4x2x32xf32>
    %71 = vector.extract_strided_slice %70 {offsets = [0, 0, 0, 0], sizes = [2, 4, 1, 32], strides = [1, 1, 1, 1]} : vector<2x4x2x32xf32> to vector<2x4x1x32xf32>
    %72 = vector.shape_cast %71 : vector<2x4x1x32xf32> to vector<2x4x32xf32>
    %73 = vector.extract_strided_slice %70 {offsets = [0, 0, 1, 0], sizes = [2, 4, 1, 32], strides = [1, 1, 1, 1]} : vector<2x4x2x32xf32> to vector<2x4x1x32xf32>
    %74 = vector.shape_cast %73 : vector<2x4x1x32xf32> to vector<2x4x32xf32>
    %75 = arith.maximumf %72, %74 : vector<2x4x32xf32>
    %cst_26 = arith.constant dense<0.000000e+00> : vector<2x32xf32>
    %76 = vector.multi_reduction <add>, %75, %cst_26 [1] : vector<2x4x32xf32> to vector<2x32xf32>
    %cst_27 = arith.constant 4.000000e+00 : f32
    %77 = vector.broadcast %cst_27 : f32 to vector<2x32xf32>
    %78 = arith.divf %76, %77 : vector<2x32xf32>
    %c7 = arith.constant 7 : index
    %c0_28 = arith.constant 0 : index
    %79 = vector.load %arg2[%c7, %c0_28] : memref<224x128xf32, #tpu.memory_space<vmem>>, vector<1x32xf32>
    %c88 = arith.constant 88 : index
    %c0_29 = arith.constant 0 : index
    %80 = vector.load %arg2[%c88, %c0_29] : memref<224x128xf32, #tpu.memory_space<vmem>>, vector<32x96xf32>
    %c120 = arith.constant 120 : index
    %c0_30 = arith.constant 0 : index
    %81 = vector.load %arg2[%c120, %c0_30] : memref<224x128xf32, #tpu.memory_space<vmem>>, vector<1x96xf32>
    %c128 = arith.constant 128 : index
    %c0_31 = arith.constant 0 : index
    %82 = vector.load %arg2[%c128, %c0_31] : memref<224x128xf32, #tpu.memory_space<vmem>>, vector<32x32xf32>
    %c121 = arith.constant 121 : index
    %c0_32 = arith.constant 0 : index
    %83 = vector.load %arg2[%c121, %c0_32] : memref<224x128xf32, #tpu.memory_space<vmem>>, vector<1x32xf32>
    %84 = vector.shape_cast %79 : vector<1x32xf32> to vector<1x1x32xf32>
    %85 = vector.broadcast %0 : vector<2x16x1xf32> to vector<2x16x32xf32>
    %86 = vector.broadcast %84 : vector<1x1x32xf32> to vector<2x16x32xf32>
    %87 = arith.addf %85, %86 : vector<2x16x32xf32>
    %88 = vector.shape_cast %87 : vector<2x16x32xf32> to vector<32x32xf32>
    %cst_33 = arith.constant dense<0.000000e+00> : vector<32x96xf32>
    %89 = tpu.matmul %88, %80, %cst_33 {dimension_numbers = #tpu.dot_dimension_numbers<[1], [0], [0], [1], [0, 0, 1, 1], [], []>} : vector<32x32xf32>, vector<32x96xf32>, vector<32x96xf32> -> vector<32x96xf32>
    %90 = vector.broadcast %81 : vector<1x96xf32> to vector<32x96xf32>
    %91 = arith.addf %89, %90 : vector<32x96xf32>
    %92 = vector.shape_cast %91 : vector<32x96xf32> to vector<2x16x96xf32>
    %93 = vector.extract_strided_slice %92 {offsets = [0, 0, 0], sizes = [2, 16, 24], strides = [1, 1, 1]} : vector<2x16x96xf32> to vector<2x16x24xf32>
    %94 = vector.extract_strided_slice %92 {offsets = [0, 0, 24], sizes = [2, 16, 24], strides = [1, 1, 1]} : vector<2x16x96xf32> to vector<2x16x24xf32>
    %95 = vector.extract_strided_slice %92 {offsets = [0, 0, 48], sizes = [2, 16, 24], strides = [1, 1, 1]} : vector<2x16x96xf32> to vector<2x16x24xf32>
    %96 = vector.extract_strided_slice %92 {offsets = [0, 0, 72], sizes = [2, 16, 24], strides = [1, 1, 1]} : vector<2x16x96xf32> to vector<2x16x24xf32>
    %97 = tpu.concatenate %93, %94, %95, %96 in 0 : vector<2x16x24xf32>, vector<2x16x24xf32>, vector<2x16x24xf32>, vector<2x16x24xf32> -> vector<8x16x24xf32>
    %98 = vector.extract_strided_slice %97 {offsets = [0, 0, 0], sizes = [8, 16, 8], strides = [1, 1, 1]} : vector<8x16x24xf32> to vector<8x16x8xf32>
    %99 = vector.extract_strided_slice %97 {offsets = [0, 0, 8], sizes = [8, 16, 8], strides = [1, 1, 1]} : vector<8x16x24xf32> to vector<8x16x8xf32>
    %100 = vector.extract_strided_slice %97 {offsets = [0, 0, 16], sizes = [8, 16, 8], strides = [1, 1, 1]} : vector<8x16x24xf32> to vector<8x16x8xf32>
    "tpu.trace_start"() <{level = 10 : i32, message = "zqd,zkd->zqk"}> : () -> ()
    %cst_34 = arith.constant dense<0.000000e+00> : vector<8x16x16xf32>
    %101 = tpu.matmul %98, %99, %cst_34 {dimension_numbers = #tpu.dot_dimension_numbers<[2], [2], [1], [1], [0, 0, 0, 1, 1, 1], [0], [0]>} : vector<8x16x8xf32>, vector<8x16x8xf32>, vector<8x16x16xf32> -> vector<8x16x16xf32>
    "tpu.trace_stop"() : () -> ()
    %cst_35 = arith.constant dense<0xFF800000> : vector<8x16xf32>
    %102 = vector.multi_reduction <maximumf>, %101, %cst_35 [2] : vector<8x16x16xf32> to vector<8x16xf32>
    %103 = vector.shape_cast %102 : vector<8x16xf32> to vector<8x16x1xf32>
    %104 = vector.broadcast %103 : vector<8x16x1xf32> to vector<8x16x16xf32>
    %105 = arith.subf %101, %104 : vector<8x16x16xf32>
    %106 = math.exp %105 : vector<8x16x16xf32>
    %cst_36 = arith.constant dense<0.000000e+00> : vector<8x16xf32>
    %107 = vector.multi_reduction <add>, %106, %cst_36 [2] : vector<8x16x16xf32> to vector<8x16xf32>
    %108 = vector.shape_cast %107 : vector<8x16xf32> to vector<8x16x1xf32>
    %109 = tpu.reciprocal %108 {approx = true} : vector<8x16x1xf32> -> vector<8x16x1xf32>
    %110 = vector.broadcast %109 : vector<8x16x1xf32> to vector<8x16x16xf32>
    %111 = arith.mulf %106, %110 : vector<8x16x16xf32>
    %cst_37 = arith.constant dense<0.000000e+00> : vector<8x16xf32>
    %112 = vector.multi_reduction <add>, %111, %cst_37 [1] : vector<8x16x16xf32> to vector<8x16xf32>
    %113 = vector.shape_cast %112 : vector<8x16xf32> to vector<8x1x16xf32>
    %cst_38 = arith.constant 1.600000e+01 : f32
    %114 = vector.broadcast %cst_38 : f32 to vector<8x1x16xf32>
    %115 = arith.divf %113, %114 : vector<8x1x16xf32>
    "tpu.trace_start"() <{level = 10 : i32, message = "zqk,zkd->zqd"}> : () -> ()
    %cst_39 = arith.constant dense<0.000000e+00> : vector<8x1x8xf32>
    %116 = tpu.matmul %115, %100, %cst_39 {dimension_numbers = #tpu.dot_dimension_numbers<[2], [1], [1], [2], [0, 0, 0, 1, 1, 2], [0], [0]>} : vector<8x1x16xf32>, vector<8x16x8xf32>, vector<8x1x8xf32> -> vector<8x1x8xf32>
    "tpu.trace_stop"() : () -> ()
    %117 = vector.shape_cast %116 : vector<8x1x8xf32> to vector<4x2x8xf32>
    %118 = vector.extract_strided_slice %117 {offsets = [0, 0, 0], sizes = [1, 2, 8], strides = [1, 1, 1]} : vector<4x2x8xf32> to vector<1x2x8xf32>
    %119 = vector.shape_cast %118 : vector<1x2x8xf32> to vector<2x8xf32>
    %120 = vector.extract_strided_slice %117 {offsets = [1, 0, 0], sizes = [1, 2, 8], strides = [1, 1, 1]} : vector<4x2x8xf32> to vector<1x2x8xf32>
    %121 = vector.shape_cast %120 : vector<1x2x8xf32> to vector<2x8xf32>
    %122 = vector.extract_strided_slice %117 {offsets = [2, 0, 0], sizes = [1, 2, 8], strides = [1, 1, 1]} : vector<4x2x8xf32> to vector<1x2x8xf32>
    %123 = vector.shape_cast %122 : vector<1x2x8xf32> to vector<2x8xf32>
    %124 = vector.extract_strided_slice %117 {offsets = [3, 0, 0], sizes = [1, 2, 8], strides = [1, 1, 1]} : vector<4x2x8xf32> to vector<1x2x8xf32>
    %125 = vector.shape_cast %124 : vector<1x2x8xf32> to vector<2x8xf32>
    %126 = tpu.concatenate %119, %121, %123, %125 in 1 : vector<2x8xf32>, vector<2x8xf32>, vector<2x8xf32>, vector<2x8xf32> -> vector<2x32xf32>
    %cst_40 = arith.constant dense<0.000000e+00> : vector<2x32xf32>
    %127 = tpu.matmul %126, %82, %cst_40 {dimension_numbers = #tpu.dot_dimension_numbers<[1], [0], [0], [1], [0, 0, 1, 1], [], []>} : vector<2x32xf32>, vector<32x32xf32>, vector<2x32xf32> -> vector<2x32xf32>
    %128 = vector.broadcast %83 : vector<1x32xf32> to vector<2x32xf32>
    %129 = arith.addf %127, %128 : vector<2x32xf32>
    %c160 = arith.constant 160 : index
    %c0_41 = arith.constant 0 : index
    %130 = vector.load %arg2[%c160, %c0_41] : memref<224x128xf32, #tpu.memory_space<vmem>>, vector<64x64xf32>
    %c122 = arith.constant 122 : index
    %c0_42 = arith.constant 0 : index
    %131 = vector.load %arg2[%c122, %c0_42] : memref<224x128xf32, #tpu.memory_space<vmem>>, vector<1x64xf32>
    %132 = tpu.concatenate %78, %129 in 1 : vector<2x32xf32>, vector<2x32xf32> -> vector<2x64xf32>
    %cst_43 = arith.constant dense<0.000000e+00> : vector<2x64xf32>
    %133 = tpu.matmul %132, %130, %cst_43 {dimension_numbers = #tpu.dot_dimension_numbers<[1], [0], [0], [1], [0, 0, 1, 1], [], []>} : vector<2x64xf32>, vector<64x64xf32>, vector<2x64xf32> -> vector<2x64xf32>
    %134 = vector.broadcast %131 : vector<1x64xf32> to vector<2x64xf32>
    %135 = arith.addf %133, %134 : vector<2x64xf32>
    %cst_44 = arith.constant 5.000000e-01 : f32
    %136 = vector.broadcast %cst_44 : f32 to vector<2x64xf32>
    %137 = arith.mulf %136, %135 : vector<2x64xf32>
    %138 = math.tanh %137 : vector<2x64xf32>
    %cst_45 = arith.constant 1.000000e+00 : f32
    %139 = vector.broadcast %cst_45 : f32 to vector<2x64xf32>
    %140 = arith.addf %138, %139 : vector<2x64xf32>
    %cst_46 = arith.constant 5.000000e-01 : f32
    %141 = vector.broadcast %cst_46 : f32 to vector<2x64xf32>
    %142 = arith.mulf %141, %140 : vector<2x64xf32>
    %143 = arith.mulf %132, %142 : vector<2x64xf32>
    %c0_47 = arith.constant 0 : index
    %c0_48 = arith.constant 0 : index
    %144 = vector.load %arg3[%c0_47, %c0_48] : memref<2x64xf32, #tpu.memory_space<vmem>>, vector<2x64xf32>
    tpu.vector_store %arg3[%c0_47, %c0_48], %143 {strides = array<i32>} : memref<2x64xf32, #tpu.memory_space<vmem>>, vector<2x64xf32>,
    return
  }
  func.func @transform_0(%arg0: i32) -> (i32, i32, i32) {
    %c0_i32 = arith.constant 0 : i32
    %c0_i32_0 = arith.constant 0 : i32
    %c0_i32_1 = arith.constant 0 : i32
    %c0_i32_2 = arith.constant 0 : i32
    return %c0_i32, %c0_i32_0, %c0_i32_1 : i32, i32, i32
  }
  func.func @transform_1(%arg0: i32) -> (i32, i32) {
    %c0_i32 = arith.constant 0 : i32
    %c0_i32_0 = arith.constant 0 : i32
    %c0_i32_1 = arith.constant 0 : i32
    return %c0_i32, %c0_i32_0 : i32, i32
  }
  func.func @transform_2(%arg0: i32) -> (i32, i32) {
    %c0_i32 = arith.constant 0 : i32
    %c0_i32_0 = arith.constant 0 : i32
    %c0_i32_1 = arith.constant 0 : i32
    return %c0_i32, %c0_i32_0 : i32, i32
  }
}

</mosaic_0001>

<bundles_post_ra>
// kernel: cnn_attention_gate_forward.1
= control target key start
LH: loop header
LB: loop body
LE: loop exit
PB: predicated region body
PF: predicated region fallthrough
CT: control target
= control target key end

     0   :  { %7 = vsyncpa [#allocation4], 0  ;;  %s2462_s0 = inlined_call_operand.vmem [shape: f32[2,16,1], index: 0, kind: input, shape index: {}]   ;;  %s2463_s1 = inlined_call_operand.hbm [shape: f32[224,128], index: 1, kind: input, shape index: {}]   ;;  %s2464_s2 = inlined_call_operand.hbm [shape: f32[2,64], index: 2, kind: output, shape index: {}]  }
   0x1   :  { %8 = vsyncpa [#allocation5], 0  ;;  %s15_s11 = sshll.u32 %s2463_s1, 4  ;;  %s1840_s12 = smov [#allocation3]   ;;  %s16_s11 = int_to_ptr.hbm [resolvable:$true] %s15_s11 }
   0x2   :  { %s17_s13 = sshll.u32 %s1840_s12, 4  ;;  %s1841_s14 = smov 128   ;;  %s18_s13 = int_to_ptr.vmem [resolvable:$true] %s17_s13 }
   0x3   :  { %s1842_s15 = smov 8  }
   0x4   :  { %23 = dma.hbm_to_vmem [thread:$0]  %s16_s11, 3584, %s18_s13, [#allocation4], %s1841_s14, %s1841_s14, %s1842_s15  }
   0x5   :  { %1836 = dma.done.wait [#allocation4], 3584  }
   0x6   :  { %1837 = vsyncadd [#allocation4], 4294963712  ;;  %v1843_v0 = vmov 0   ;;  %v29_v1 = vld [vmem:[%s2462_s0 + $0x8] sm:$0xff]  ;;  %v28_v2 = vld [vmem:[%s2462_s0] sm:$0xff]  ;;  %vm38_vm0 = vcmask 1041408  }
   0x7   :  { %1670 = vset.pattern.permute.xlu1 %v1843_v0  ;;  %1669 = vset.pattern.permute.xlu0 %v1843_v0  ;;  %v39_v3 = vrot.slane %v28_v2, 6  ;;  %v577_v4 = vld [vmem:[#allocation3 + $0x70] sm:$0xff]  ;;  %v576_v5 = vld [vmem:[#allocation3 + $0x68] sm:$0xff]  ;;  %v575_v7 = vld [vmem:[#allocation3 + $0x60] sm:$0xff]  ;;  %v40_v10 = vrot.slane %v29_v1, 6  ;;  %vm99_vm1 = vcmask 1046528  }
   0x8   :  { %1671 = vset.pattern.permute.xlu2 %v1843_v0  ;;  %589 = vperm.xlu1 %1670, %v29_v1   ;;  %v30_v8 = vld [vmem:[%s2462_s0 + $0x10] sm:$0xff]  ;;  %v31_v9 = vld [vmem:[%s2462_s0 + $0x18] sm:$0xff]  ;;  %v574_v18 = vld [vmem:[#allocation3 + $0x58] sm:$0xff]  ;;  %vm131_vm2 = vcmask 1045504   ;;  %vm163_vm3 = vcmask 1044480   ;;  %vm195_vm4 = vcmask 1043456  }
   0x9   :  { %585 = vperm.xlu0 %1669, %v28_v2   ;;  %631 = vmatpush.msra.mxu1 %v577_v4  ;;  %v49_v6 = vsel %vm38_vm0, 0.0, %v39_v3  ;;  %v41_v11 = vsel %vm38_vm0, %v39_v3, %v40_v10  ;;  %v42_v12 = vrot.slane %v30_v8, 6  ;;  %v51_v14 = vsel %vm38_vm0, %v40_v10, 0.0  ;;  %v32_v19 = vld [vmem:[#allocation3] sm:$0x1f]  ;;  %s1845_s0 = smov 104  }
   0xa   :  { %1647 = vmatpush.msra.mxu2 %v577_v4  ;;  %55 = vperm.xlu2 %1671, %v49_v6   ;;  %v43_v15 = vrot.slane %v31_v9, 6  ;;  %v1895_v20 = vperm.slane %v32_v19, 1  ;;  %v1897_v22 = vperm.slane %v32_v19, 2  ;;  %v1899_v23 = vperm.slane %v32_v19, 3  ;;  %v1712_v50 = vld [vmem:[#allocation3 + $0x7] ss:$0 sm:$0xff] }
   0xb   :  { %632 = vmatpush.msra.mxu1 %v576_v5  ;;  %v50_v13 = vsel %vm38_vm0, 0.0, %v42_v12  ;;  %v1901_v24 = vperm.slane %v32_v19, 4  ;;  %v1905_v27 = vperm.slane %v32_v19, 0  ;;  %v1944_v51 = vld [vmem:[#allocation3 + $0x5] ss:$0 sm:$0xff]  ;;  %vm606_vm5 = vcmask 261120  }
   0xc   :  { %1648 = vmatpush.msra.mxu2 %v576_v5  ;;  %v44_v16 = vsel %vm38_vm0, %v42_v12, %v43_v15  ;;  %v52_v17 = vsel %vm38_vm0, %v43_v15, 0.0  ;;  %vm353_vm6 = vcmask 1041409   ;;  %vm355_vm7 = vcmask 1042434   ;;  %s1846_s23 = smov 56   ;;  %s1847_s24 = smov 120  }
   0xd   :  { %633 = vmatpush.msra.mxu1 %v575_v7  ;;  %vm326_vm8 = vcmask 654336   ;;  %vm357_vm9 = vcmask 1043459   ;;  %vm359_vm10 = vcmask 1044484   ;;  %vm361_vm11 = vcmask 1045509   ;;  %s1848_s25 = smov 80   ;;  %s1849_s26 = smov 16  }
   0xe   :  { %1649 = vmatpush.msra.mxu2 %v575_v7  ;;  %vm377_vm12 = vcmask 1046534   ;;  %vm370_vm13 = vcmask 128000   ;;  %vm393_vm14 = vcmask 1047559   ;;  %s1850_s27 = smov 48   ;;  %s1851_s28 = smov 32   ;;  %vm680_vm15 = vcmask 64512  }
   0xf   :  { %634 = vmatpush.msra.mxu1 %v574_v18  ;;  %s1852_s29 = smov 64   ;;  %vm386_vm0 = vcmask 260224   ;;  %s1853_s30 = smov 112  }
  0x10   :  { %593 = vperm.xlu1 %1670, %v30_v8   ;;  %1650 = vmatpush.msra.mxu2 %v574_v18  ;;  %s1855_s3 = smov 24   ;;  %s1857_s4 = smov [#allocation6]  }
  0x11   :  { %597 = vperm.xlu0 %1669, %v31_v9   ;;  %s1563_s5 = sshll.u32 %s1857_s4, 4  ;;  %s1565_s8 = sshll.u32 %s2464_s2, 4  ;;  %s1564_s5 = int_to_ptr.vmem [resolvable:$true] %s1563_s5  ;;  %s1566_s8 = int_to_ptr.hbm [resolvable:$true] %s1565_s8 }
  0x12   :  { %59 = vperm.xlu2 %1671, %v41_v11  }
  0x18   :  { %64 = vperm.xlu1 %1670, %v50_v13  }
  0x19   :  { %78 = vperm.xlu0 %1669, %v51_v14  }
  0x1a   :  { %68 = vperm.xlu2 %1671, %v44_v16  }
  0x21   :  { %83 = vperm.xlu0 %1669, %v52_v17  }
  0x64   :  { %v56_v21 = vpop.permute.xlu2 %55 }
  0x65   :  { %v87_v25 = vmul.f32 %v1895_v20, %v56_v21  ;;  %v119_v26 = vmul.f32 %v1897_v22, %v56_v21  ;;  %v151_v28 = vmul.f32 %v1899_v23, %v56_v21  ;;  %v183_v30 = vmul.f32 %v1901_v24, %v56_v21 }
  0x66   :  { %v72_v36 = vmul.f32 %v1905_v27, %v56_v21 }
  0x67   :  { %v100_v29 = vrot.slane %v87_v25, 1  ;;  %v132_v32 = vrot.slane %v119_v26, 2  ;;  %v164_v38 = vrot.slane %v151_v28, 3  ;;  %v196_v42 = vrot.slane %v183_v30, 4 }
  0x6c   :  { %v1909_v31 = vpop.permute.xlu2 %59 }
  0x6d   :  { %v1913_v33 = vmul.f32 %v1895_v20, %v1909_v31  ;;  %v1917_v34 = vmul.f32 %v1897_v22, %v1909_v31  ;;  %v1921_v35 = vmul.f32 %v1899_v23, %v1909_v31  ;;  %v1926_v37 = vmul.f32 %v1901_v24, %v1909_v31 }
  0x6e   :  { %v73_v25 = vmul.f32 %v1905_v27, %v1909_v31 }
  0x6f   :  { %v101_v39 = vrot.slane %v1913_v33, 1  ;;  %v133_v40 = vrot.slane %v1917_v34, 2  ;;  %v165_v41 = vrot.slane %v1921_v35, 3  ;;  %v197_v45 = vrot.slane %v1926_v37, 4 }
  0x71   :  { %v102_v43 = vsel %vm99_vm1, %v100_v29, %v101_v39  ;;  %v134_v44 = vsel %vm131_vm2, %v132_v32, %v133_v40  ;;  %v166_v47 = vsel %vm163_vm3, %v164_v38, %v165_v41  ;;  %v198_v49 = vsel %vm195_vm4, %v196_v42, %v197_v45 }
  0x72   :  { %v114_v46 = vadd.f32 %v102_v43, %v72_v36 }
  0x74   :  { %v146_v48 = vadd.f32 %v134_v44, %v114_v46  ;;  %v1948_v63 = vpop.permute.xlu2 %68 }
  0x75   :  { %v1953_v10 = vmul.f32 %v1895_v20, %v1948_v63  ;;  %v1960_v13 = vmul.f32 %v1897_v22, %v1948_v63  ;;  %v1964_v14 = vmul.f32 %v1899_v23, %v1948_v63  ;;  %v1983_v26 = vmul.f32 %v1901_v24, %v1948_v63 }
  0x76   :  { %v178_v52 = vadd.f32 %v166_v47, %v146_v48 }
  0x77   :  { %v106_v30 = vrot.slane %v1953_v10, 1  ;;  %v138_v32 = vrot.slane %v1960_v13, 2  ;;  %v170_v36 = vrot.slane %v1964_v14, 3 }
  0x78   :  { %v210_v53 = vadd.f32 %v198_v49, %v178_v52 }
  0x7a   :  { %v590_v54 = vpop.permute.xlu1 %589  ;;  %v215_v57 = vadd.f32 %v1944_v51, %v210_v53 }
  0x7b   :  { %v586_v55 = vpop.permute.xlu0 %585  ;;  %v602_v62 = vadd.f32 %v1712_v50, %v590_v54 }
  0x7c   :  { %v601_v56 = vadd.f32 %v1712_v50, %v586_v55  ;;  %v219_v58 = vmax.f32 %v215_v57, 0.0 }
  0x7e   :  { %1601 = vmatmul.msk.f32.vlgmr.msra.gmra.mxu1 %vm606_vm5, %v601_v56  ;;  %v227_v59 = vrot.slane %v219_v58, 2  ;;  %v228_v60 = vrot.slane %v219_v58, 4  ;;  %v229_v61 = vrot.slane %v219_v58, 6  ;;  %v1575_v5 = vrot.slane %v219_v58, 9 }
  0x80   :  { %v1576_v0 = vrot.slane %v227_v59, 9  ;;  %v1577_v1 = vrot.slane %v228_v60, 9  ;;  %v1578_v2 = vrot.slane %v229_v61, 9  ;;  %v299_v15 = vmax.f32 %v219_v58, %v1575_v5 }
  0x81   :  { %v202_v58 = vrot.slane %v1983_v26, 4 }
  0x82   :  { %v594_v3 = vpop.permute.xlu1 %593  ;;  %v300_v7 = vmax.f32 %v227_v59, %v1576_v0  ;;  %v301_v8 = vmax.f32 %v228_v60, %v1577_v1  ;;  %v302_v9 = vmax.f32 %v229_v61, %v1578_v2  ;;  %v341_v38 = vperm.slane %v299_v15, 0 }
  0x83   :  { %v598_v4 = vpop.permute.xlu0 %597  ;;  %v603_v21 = vadd.f32 %v1712_v50, %v594_v3 }
  0x84   :  { %v604_v6 = vadd.f32 %v1712_v50, %v598_v4  ;;  %v342_v11 = vperm.slane %v300_v7, 0  ;;  %v1956_v12 = vperm.slane %v301_v8, 0  ;;  %v1966_v16 = vperm.slane %v302_v9, 0 }
  0x86   :  { %1604 = vmatmul.msk.f32.vlgmr.msra.gmra.mxu2 %vm606_vm5, %v604_v6  ;;  %1602 = vmatmul.msk.f32.gmra.mxu1 %vm606_vm5, %v602_v62  ;;  %v405_v17 = vsel %vm353_vm6, %v1956_v12, %v342_v11  ;;  %v1977_v19 = vsel %vm353_vm6, %v1966_v16, %v1956_v12  ;;  %v354_v1 = vsel %vm353_vm6, %v342_v11, %v341_v38  ;;  %v1844_v11 = vmov 0.0  }
  0x87   :  { %v1972_v18 = vsel %vm355_vm7, %v1966_v16, %v405_v17  ;;  %327 = vst.msk [vmem:[#allocation2] sm:$0xff] %vm326_vm8, %v1844_v11  ;;  %v356_v35 = vsel %vm355_vm7, %v1956_v12, %v354_v1 }
  0x88   :  { %328 = vst.msk [vmem:[#allocation2 + $0x8] sm:$0xff] %vm326_vm8, %v1844_v11  ;;  %v358_v38 = vsel %vm357_vm9, %v1966_v16, %v356_v35 }
  0x8a   :  { %v65_v28 = vpop.permute.xlu1 %64 }
  0x8b   :  { %v79_v29 = vpop.permute.xlu0 %78  ;;  %v74_v42 = vmul.f32 %v1905_v27, %v65_v28  ;;  %v90_v43 = vmul.f32 %v1895_v20, %v65_v28  ;;  %v122_v44 = vmul.f32 %v1897_v22, %v65_v28  ;;  %v154_v31 = vmul.f32 %v1899_v23, %v65_v28 }
  0x8c   :  { %v186_v46 = vmul.f32 %v1901_v24, %v65_v28  ;;  %v89_v47 = vmul.f32 %v1895_v20, %v79_v29  ;;  %v121_v48 = vmul.f32 %v1897_v22, %v79_v29  ;;  %v153_v49 = vmul.f32 %v1899_v23, %v79_v29 }
  0x8d   :  { %v105_v50 = vrot.slane %v90_v43, 1  ;;  %v137_v52 = vrot.slane %v122_v44, 2  ;;  %v169_v53 = vrot.slane %v154_v31, 3  ;;  %v185_v54 = vmul.f32 %v1901_v24, %v79_v29 }
  0x8e   :  { %1603 = vmatmul.msk.f32.gmra.mxu1 %vm606_vm5, %v603_v21  ;;  %v201_v55 = vrot.slane %v186_v46, 4  ;;  %v103_v56 = vrot.slane %v89_v47, 1  ;;  %v135_v57 = vrot.slane %v121_v48, 2  ;;  %v167_v62 = vrot.slane %v153_v49, 3 }
  0x8f   :  { %v107_v59 = vsel %vm99_vm1, %v105_v50, %v106_v30  ;;  %v139_v60 = vsel %vm131_vm2, %v137_v52, %v138_v32  ;;  %v199_v3 = vrot.slane %v185_v54, 4  ;;  %v171_v4 = vsel %vm163_vm3, %v169_v53, %v170_v36 }
  0x90   :  { %v104_v61 = vsel %vm99_vm1, %v101_v39, %v103_v56  ;;  %v116_v0 = vadd.f32 %v107_v59, %v74_v42  ;;  %v136_v5 = vsel %vm131_vm2, %v133_v40, %v135_v57  ;;  %v203_v33 = vsel %vm195_vm4, %v201_v55, %v202_v58 }
  0x91   :  { %v115_v2 = vadd.f32 %v104_v61, %v73_v25  ;;  %v168_v34 = vsel %vm163_vm3, %v165_v41, %v167_v62  ;;  %v75_v40 = vmul.f32 %v1905_v27, %v1948_v63 }
  0x92   :  { %v148_v6 = vadd.f32 %v139_v60, %v116_v0 }
  0x93   :  { %v84_v7 = vpop.permute.xlu0 %83  ;;  %v147_v39 = vadd.f32 %v136_v5, %v115_v2 }
  0x94   :  { %v92_v8 = vmul.f32 %v1895_v20, %v84_v7  ;;  %v124_v9 = vmul.f32 %v1897_v22, %v84_v7  ;;  %v156_v10 = vmul.f32 %v1899_v23, %v84_v7  ;;  %v180_v13 = vadd.f32 %v171_v4, %v148_v6 }
  0x95   :  { %v188_v15 = vmul.f32 %v1901_v24, %v84_v7  ;;  %v179_v20 = vadd.f32 %v168_v34, %v147_v39  ;;  %v200_v23 = vsel %vm195_vm4, %v197_v45, %v199_v3 }
  0x96   :  { %v108_v17 = vrot.slane %v92_v8, 1  ;;  %v140_v22 = vrot.slane %v124_v9, 2  ;;  %v212_v21 = vadd.f32 %v203_v33, %v180_v13  ;;  %v172_v63 = vrot.slane %v156_v10, 3 }
  0x97   :  { %v211_v41 = vadd.f32 %v200_v23, %v179_v20  ;;  %v204_v25 = vrot.slane %v188_v15, 4 }
  0x98   :  { %v109_v27 = vsel %vm99_vm1, %v106_v30, %v108_v17  ;;  %v217_v24 = vadd.f32 %v1944_v51, %v212_v21  ;;  %v141_v29 = vsel %vm131_vm2, %v138_v32, %v140_v22  ;;  %v173_v30 = vsel %vm163_vm3, %v170_v36, %v172_v63 }
  0x99   :  { %v117_v26 = vadd.f32 %v109_v27, %v75_v40  ;;  %v216_v28 = vadd.f32 %v1944_v51, %v211_v41  ;;  %v205_v42 = vsel %vm195_vm4, %v202_v58, %v204_v25  ;;  %vm402_vm1 = vcmask 392448  }
  0x9a   :  { %v221_v37 = vmax.f32 %v217_v24, 0.0  ;;  %vm423_vm2 = vcmask 522624   ;;  %vm442_vm3 = vcmask 652800   ;;  %vm957_vm4 = vcmask 130048  }
  0x9b   :  { %v149_v45 = vadd.f32 %v141_v29, %v117_v26  ;;  %v220_v12 = vmax.f32 %v216_v28, 0.0 }
  0x9c   :  { %v233_v44 = vrot.slane %v221_v37, 2  ;;  %v234_v32 = vrot.slane %v221_v37, 4  ;;  %v235_v31 = vrot.slane %v221_v37, 6  ;;  %v1583_v50 = vrot.slane %v221_v37, 9 }
  0x9d   :  { %v181_v43 = vadd.f32 %v173_v30, %v149_v45  ;;  %v230_v46 = vrot.slane %v220_v12, 2  ;;  %v231_v47 = vrot.slane %v220_v12, 4  ;;  %v1579_v48 = vrot.slane %v220_v12, 9 }
  0x9e   :  { %v232_v49 = vrot.slane %v220_v12, 6  ;;  %v1584_v52 = vrot.slane %v233_v44, 9  ;;  %v1585_v53 = vrot.slane %v234_v32, 9  ;;  %v1586_v57 = vrot.slane %v235_v31, 9 }
  0x9f   :  { %v213_v16 = vadd.f32 %v205_v42, %v181_v43  ;;  %v1580_v14 = vrot.slane %v230_v46, 9  ;;  %v1581_v54 = vrot.slane %v231_v47, 9  ;;  %v303_v36 = vmax.f32 %v220_v12, %v1579_v48 }
  0xa0   :  { %v1582_v55 = vrot.slane %v232_v49, 9  ;;  %v307_v58 = vmax.f32 %v221_v37, %v1583_v50  ;;  %v308_v59 = vmax.f32 %v233_v44, %v1584_v52  ;;  %v309_v2 = vmax.f32 %v234_v32, %v1585_v53 }
  0xa1   :  { %v218_v56 = vadd.f32 %v1944_v51, %v213_v16  ;;  %v304_v60 = vmax.f32 %v230_v46, %v1580_v14  ;;  %v305_v61 = vmax.f32 %v231_v47, %v1581_v54  ;;  %v345_v62 = vperm.slane %v303_v36, 0 }
  0xa2   :  { %v306_v0 = vmax.f32 %v232_v49, %v1582_v55  ;;  %v310_v3 = vmax.f32 %v235_v31, %v1586_v57  ;;  %v347_v4 = vperm.slane %v307_v58, 0  ;;  %v348_v27 = vperm.slane %v308_v59, 0  ;;  %v1714_v55 = vld [vmem:[#allocation3 + $0x78] ss:$0 sm:$0xff] }
  0xa3   :  { %v222_v1 = vmax.f32 %v218_v56, 0.0  ;;  %v346_v5 = vperm.slane %v304_v60, 0  ;;  %v360_v6 = vsel %vm359_vm10, %v345_v62, %v358_v38  ;;  %v375_v33 = vperm.slane %v305_v61, 0 }
  0xa4   :  { %v391_v7 = vperm.slane %v306_v0, 0  ;;  %v407_v39 = vsel %vm357_vm9, %v345_v62, %v1972_v18  ;;  %v427_v51 = vsel %vm355_vm7, %v345_v62, %v1977_v19  ;;  %v349_v25 = vperm.slane %v309_v2, 0 }
  0xa5   :  { %v236_v8 = vrot.slane %v222_v1, 2  ;;  %v237_v9 = vrot.slane %v222_v1, 4  ;;  %v362_v10 = vsel %vm361_vm11, %v346_v5, %v360_v6  ;;  %v408_v11 = vsel %vm359_vm10, %v346_v5, %v407_v39 }
  0xa6   :  { %v428_v34 = vsel %vm357_vm9, %v346_v5, %v427_v51  ;;  %v238_v40 = vrot.slane %v222_v1, 6  ;;  %v2048_v13 = vsel %vm377_vm12, %v375_v33, %v362_v10  ;;  %v409_v15 = vsel %vm361_vm11, %v375_v33, %v408_v11  ;;  %371 = vst.msk [vmem:[#allocation2 + $0x2] sm:$0x3f] %vm370_vm13, %v362_v10  ;;  %v321_v10 = vld [vmem:[#allocation3 + $0x38] sm:$0xff]  ;;  %v320_v11 = vld [vmem:[#allocation3 + $0x30] sm:$0xff] }
  0xa7   :  { %v429_v20 = vsel %vm359_vm10, %v375_v33, %v428_v34  ;;  %v1587_v18 = vrot.slane %v222_v1, 9  ;;  %v2054_v19 = vsel %vm377_vm12, %v391_v7, %v409_v15  ;;  %v2058_v17 = vsel %vm393_vm14, %v391_v7, %v2048_v13  ;;  %v324_v33 = vld [vmem:[#allocation3 + $0x50] sm:$0xff]  ;;  %v318_v15 = vld [vmem:[#allocation3 + $0x20] sm:$0xff] }
  0xa8   :  { %v2061_v22 = vsel %vm361_vm11, %v391_v7, %v429_v20  ;;  %v1588_v23 = vrot.slane %v236_v8, 9  ;;  %v1589_v21 = vrot.slane %v237_v9, 9  ;;  %v1590_v35 = vrot.slane %v238_v40, 9  ;;  %v323_v7 = vld [vmem:[#allocation3 + $0x48] sm:$0xff]  ;;  %460 = vmatpush.msra.mxu0 %v324_v33 }
  0xa9   :  { %v311_v41 = vmax.f32 %v222_v1, %v1587_v18  ;;  %v350_v24 = vperm.slane %v310_v3, 0  ;;  %v363_v37 = vsel %vm353_vm6, %v348_v27, %v347_v4  ;;  %v411_v30 = vsel %vm353_vm6, %v349_v25, %v348_v27  ;;  %v317_v18 = vld [vmem:[#allocation3 + $0x18] sm:$0xff] }
  0xaa   :  { %v312_v63 = vmax.f32 %v236_v8, %v1588_v23  ;;  %v313_v26 = vmax.f32 %v237_v9, %v1589_v21  ;;  %v314_v28 = vmax.f32 %v238_v40, %v1590_v35  ;;  %v364_v38 = vsel %vm355_vm7, %v349_v25, %v363_v37  ;;  %461 = vmatpush.msra.mxu0 %v323_v7  ;;  %v322_v9 = vld [vmem:[#allocation3 + $0x40] sm:$0xff]  ;;  %v315_v21 = vld [vmem:[#allocation3 + $0x8] sm:$0xff] }
  0xab   :  { %v351_v29 = vperm.slane %v311_v41, 0  ;;  %v431_v12 = vsel %vm353_vm6, %v350_v24, %v349_v25  ;;  %v365_v42 = vsel %vm357_vm9, %v350_v24, %v364_v38  ;;  %v412_v47 = vsel %vm355_vm7, %v350_v24, %v411_v30 }
  0xac   :  { %v352_v45 = vperm.slane %v312_v63, 0  ;;  %v376_v43 = vperm.slane %v313_v26, 0  ;;  %v392_v31 = vperm.slane %v314_v28, 0  ;;  %462 = vmatpush.msra.mxu0 %v322_v9 }
  0xad   :  { %v432_v44 = vsel %vm355_vm7, %v351_v29, %v431_v12  ;;  %v366_v32 = vsel %vm359_vm10, %v351_v29, %v365_v42  ;;  %v413_v16 = vsel %vm357_vm9, %v351_v29, %v412_v47 }
  0xae   :  { %v433_v46 = vsel %vm357_vm9, %v352_v45, %v432_v44  ;;  %v367_v48 = vsel %vm361_vm11, %v352_v45, %v366_v32  ;;  %v414_v53 = vsel %vm359_vm10, %v352_v45, %v413_v16  ;;  %463 = vmatpush.msra.mxu0 %v321_v10 }
  0xaf   :  { %v434_v49 = vsel %vm359_vm10, %v376_v43, %v433_v46  ;;  %v2076_v50 = vsel %vm377_vm12, %v376_v43, %v367_v48  ;;  %372 = vst.msk [vmem:[#allocation2 + $0xa] sm:$0x3f] %vm370_vm13, %v367_v48  ;;  %v415_v54 = vsel %vm361_vm11, %v376_v43, %v414_v53  ;;  %vm1481_vm10 = vcmask 195584  }
  0xb0   :  { %v435_v52 = vsel %vm361_vm11, %v392_v31, %v434_v49  ;;  %v395_v14 = vsel %vm393_vm14, %v392_v31, %v2076_v50  ;;  %v2085_v36 = vsel %vm377_vm12, %v392_v31, %v415_v54  ;;  %464 = vmatpush.msra.mxu0 %v320_v11  ;;  %vm549_vm11 = vcmask 257024  }
  0xb1   :  { %vm1556_vm12 = vcmask 517120  }
  0xfb   :  { %v636_v56 = vpop.f32.mrf.mxu1 }
  0xfc   :  { %v2087_v57 = vadd.f32 %v1714_v55, %v636_v56 }
  0xfe   :  { %652 = vrot.lane.b32.xlu1 %v2087_v57, %s1845_s0  ;;  %668 = vrot.lane.b32.xlu2 %v2087_v57, %s1846_s23 }
 0x103   :  { %v639_v60 = vpop.f32.mrf.mxu1 }
 0x104   :  { %v2097_v61 = vadd.f32 %v1714_v55, %v639_v60 }
 0x109   :  { %v645_v58 = vpop.f32.mrf.mxu2 }
 0x10a   :  { %v2091_v59 = vadd.f32 %v1714_v55, %v645_v58 }
 0x10b   :  { %v642_v62 = vpop.f32.mrf.mxu1 }
 0x10c   :  { %714 = vrot.lane.b32.xlu0 %v2091_v59, %s1847_s24  ;;  %658 = vrot.lane.b32.xlu1 %v2091_v59, %s1845_s0  ;;  %v2102_v0 = vadd.f32 %v1714_v55, %v642_v62  ;;  %v1677_v28 = vpack.i.bf16 %v2097_v61, %v2091_v59 }
 0x10d   :  { %674 = vrot.lane.b32.xlu2 %v2091_v59, %s1846_s23 }
 0x114   :  { %670 = vrot.lane.b32.xlu0 %v2097_v61, %s1846_s23  ;;  %660 = vrot.lane.b32.xlu1 %v2087_v57, %s1848_s25 }
 0x115   :  { %654 = vrot.lane.b32.xlu2 %v2097_v61, %s1845_s0 }
 0x11c   :  { %656 = vrot.lane.b32.xlu0 %v2102_v0, %s1845_s0  ;;  %678 = vrot.lane.b32.xlu1 %v2097_v61, %s1847_s24 }
 0x11d   :  { %666 = vrot.lane.b32.xlu2 %v2091_v59, %s1848_s25 }
 0x124   :  { %662 = vrot.lane.b32.xlu1 %v2097_v61, %s1848_s25  ;;  %380 = vrot.lane.b32.xlu0 %v2048_v13, %s1849_s26  ;;  %v319_v13 = vld [vmem:[#allocation3 + $0x28] sm:$0xff] }
 0x125   :  { %676 = vrot.lane.b32.xlu2 %v2087_v57, %s1847_s24  ;;  %465 = vmatpush.msra.mxu0 %v319_v13 }
 0x127   :  { %466 = vmatpush.msra.mxu0 %v318_v15 }
 0x129   :  { %467 = vmatpush.msra.mxu0 %v317_v18 }
 0x12c   :  { %672 = vrot.lane.b32.xlu1 %v2102_v0, %s1846_s23  ;;  %712 = vrot.lane.b32.xlu0 %v2102_v0, %s1847_s24 }
 0x12d   :  { %417 = vrot.lane.b32.xlu2 %v2054_v19, %s1850_s27  ;;  %v316_v19 = vld [vmem:[#allocation3 + $0x10] sm:$0xff] }
 0x12e   :  { %468 = vmatpush.msra.mxu0 %v316_v19 }
 0x130   :  { %469 = vmatpush.msra.mxu0 %v315_v21 }
 0x134   :  { %664 = vrot.lane.b32.xlu0 %v2102_v0, %s1848_s25  ;;  %396 = vrot.lane.b32.xlu1 %v2058_v17, %s1851_s28 }
 0x13c   :  { %436 = vrot.lane.b32.xlu0 %v2061_v22, %s1852_s29 }
 0x158   :  { %v2122_v1 = vpop.permute.xlu2 %668 }
 0x167   :  { %v2124_v2 = vpop.permute.xlu2 %674 }
 0x168   :  { %924 = vrot.lane.b32.xlu1 %v2124_v2, %s1847_s24 }
 0x16f   :  { %v2128_v3 = vpop.permute.xlu2 %654 }
 0x170   :  { %749 = vrot.lane.b32.xlu0 %v2128_v3, %s1847_s24  ;;  %v2132_v4 = vpop.permute.xlu1 %652 }
 0x171   :  { %747 = vrot.lane.b32.xlu2 %v2132_v4, %s1847_s24 }
 0x177   :  { %v2146_v8 = vpop.permute.xlu2 %666 }
 0x178   :  { %398 = vrot.lane.b32.xlu0 %v395_v14, %s1851_s28 }
 0x17e   :  { %v2137_v5 = vpop.permute.xlu1 %658  ;;  %v715_v6 = vpop.permute.xlu0 %714 }
 0x17f   :  { %1609 = vmatpush.xpose.msk.msra.mxu3 %vm680_vm15, %v715_v6  ;;  %784 = vrot.lane.b32.xlu2 %v2137_v5, %s1847_s24  ;;  %v677_v20 = vpop.permute.xlu2 %676  ;;  %v1672_v24 = vpack.i.bf16 %v2128_v3, %v2137_v5 }
 0x180   :  { %438 = vrot.lane.b32.xlu0 %v435_v52, %s1852_s29 }
 0x186   :  { %v2142_v39 = vpop.permute.xlu1 %660  ;;  %v2144_v51 = vpop.permute.xlu0 %670 }
 0x187   :  { %382 = vrot.lane.b32.xlu2 %v2076_v50, %s1849_s26  ;;  %v418_v25 = vpop.permute.xlu2 %417 }
 0x188   :  { %854 = vrot.lane.b32.xlu0 %v2146_v8, %s1847_s24 }
 0x18e   :  { %v679_v34 = vpop.permute.xlu1 %678  ;;  %v2152_v40 = vpop.permute.xlu0 %656 }
 0x18f   :  { %1605 = vmatpush.xpose.msk.msrb.mxu2 %vm680_vm15, %v679_v34  ;;  %419 = vrot.lane.b32.xlu2 %v2085_v36, %s1850_s27  ;;  %v1682_v17 = vpack.i.bf16 %v2132_v4, %v2152_v40 }
 0x190   :  { %782 = vrot.lane.b32.xlu1 %v2152_v40, %s1847_s24  ;;  %817 = vrot.lane.b32.xlu0 %v2142_v39, %s1847_s24 }
 0x193   :  { %1606 = vmatpush.xpose.msk.msrb.mxu2 %vm680_vm15, %v677_v20 }
 0x196   :  { %v2164_v22 = vpop.permute.xlu1 %662  ;;  %v381_v23 = vpop.permute.xlu0 %380  ;;  %1607 = vmatmul.msk.f32.vlgmr.msrb.gmra.mxu2 %vm680_vm15, %v2087_v57 }
 0x197   :  { %887 = vrot.lane.b32.xlu2 %v2122_v1, %s1847_s24  ;;  %387 = vst.msk [vmem:[#allocation2 + $0x1] sm:$0x7f] %vm386_vm0, %v381_v23 }
 0x198   :  { %889 = vrot.lane.b32.xlu1 %v2144_v51, %s1847_s24  ;;  %1683 = vrot.lane.b32.xlu0 %v1682_v17, %s1853_s30 }
 0x19e   :  { %v2174_v35 = vpop.permute.xlu1 %672  ;;  %v713_v41 = vpop.permute.xlu0 %712  ;;  %1608 = vmatmul.msk.f32.gmra.mxu2 %vm680_vm15, %v2097_v61 }
 0x19f   :  { %1610 = vmatpush.xpose.msk.msra.mxu3 %vm680_vm15, %v713_v41 }
 0x1a0   :  { %922 = vrot.lane.b32.xlu1 %v2174_v35, %s1847_s24 }
 0x1a2   :  { %1611 = vmatmul.msk.f32.vlgmr.msra.gmra.mxu3 %vm680_vm15, %v2102_v0 }
 0x1a6   :  { %v2183_v27 = vpop.permute.xlu0 %664  ;;  %v397_v63 = vpop.permute.xlu1 %396 }
 0x1a7   :  { %852 = vrot.lane.b32.xlu2 %v2183_v27, %s1847_s24  ;;  %403 = vst.msk [vmem:[#allocation2] sm:$0xff] %vm402_vm1, %v397_v63 }
 0x1a8   :  { %819 = vrot.lane.b32.xlu1 %v2164_v22, %s1847_s24  ;;  %424 = vst.msk [vmem:[#allocation2] sm:$0x7f] %vm423_vm2, %v418_v25 }
 0x1aa   :  { %1612 = vmatmul.msk.f32.gmra.mxu3 %vm680_vm15, %v2091_v59 }
 0x1ae   :  { %v437_v26 = vpop.permute.xlu0 %436 }
 0x1af   :  { %443 = vst.msk [vmem:[#allocation2] sm:$0x3f] %vm442_vm3, %v437_v26  ;;  %1673 = vrot.lane.b32.xlu2 %v1672_v24, %s1853_s30 }
 0x1b0   :  { %1678 = vrot.lane.b32.xlu1 %v1677_v28, %s1853_s30 }
 0x1b6   :  { %v445_v29 = vld [vmem:[#allocation2] sm:$0xff] }
 0x1b7   :  { %1591 = vmatmul.msk.f32.vlgmr.msra.gmra.mxu0 %vm326_vm8, %v445_v29 }
 0x1cb   :  { %v748_v37 = vpop.permute.xlu2 %747 }
 0x1d9   :  { %v785_v45 = vpop.permute.xlu2 %784 }
 0x1da   :  { %1617 = vmatpush.xpose.msk.msrb.mxu3 %vm680_vm15, %v785_v45  ;;  %v925_v32 = vpop.permute.xlu1 %924 }
 0x1e1   :  { %v383_v38 = vpop.permute.xlu2 %382 }
 0x1e2   :  { %v750_v12 = vpop.permute.xlu0 %749  ;;  %388 = vst.msk [vmem:[#allocation2 + $0x9] sm:$0x7f] %vm386_vm0, %v383_v38 }
 0x1e3   :  { %1613 = vmatpush.xpose.msk.msra.mxu2 %vm680_vm15, %v750_v12 }
 0x1e7   :  { %1614 = vmatpush.xpose.msk.msra.mxu2 %vm680_vm15, %v748_v37 }
 0x1e9   :  { %v420_v30 = vpop.permute.xlu2 %419 }
 0x1ea   :  { %v399_v42 = vpop.permute.xlu0 %398  ;;  %1615 = vmatmul.msk.f32.vlgmr.msra.gmra.mxu2 %vm680_vm15, %v2132_v4 }
 0x1eb   :  { %404 = vst.msk [vmem:[#allocation2 + $0x8] sm:$0xff] %vm402_vm1, %v399_v42 }
 0x1ec   :  { %425 = vst.msk [vmem:[#allocation2 + $0x8] sm:$0x7f] %vm423_vm2, %v420_v30 }
 0x1f1   :  { %v888_v44 = vpop.permute.xlu2 %887 }
 0x1f2   :  { %v439_v43 = vpop.permute.xlu0 %438  ;;  %1616 = vmatmul.msk.f32.gmra.mxu2 %vm680_vm15, %v2128_v3 }
 0x1f3   :  { %444 = vst.msk [vmem:[#allocation2 + $0x8] sm:$0x3f] %vm442_vm3, %v439_v43 }
 0x1fa   :  { %v855_v31 = vpop.permute.xlu0 %854  ;;  %v446_v46 = vld [vmem:[#allocation2 + $0x8] sm:$0xff] }
 0x1fb   :  { %1592 = vmatmul.msk.f32.gmra.mxu0 %vm326_vm8, %v446_v46  ;;  %1625 = vmatpush.xpose.msk.msrb.mxu1 %vm680_vm15, %v855_v31 }
 0x201   :  { %v853_v47 = vpop.permute.xlu2 %852 }
 0x202   :  { %v783_v48 = vpop.permute.xlu1 %782  ;;  %1626 = vmatpush.xpose.msk.msrb.mxu1 %vm680_vm15, %v853_v47  ;;  %v818_v49 = vpop.permute.xlu0 %817 }
 0x203   :  { %1618 = vmatpush.xpose.msk.msrb.mxu3 %vm680_vm15, %v783_v48 }
 0x205   :  { %1627 = vmatmul.msk.f32.vlgmr.msrb.gmra.mxu1 %vm680_vm15, %v2183_v27 }
 0x206   :  { %1619 = vmatmul.msk.f32.vlgmr.msrb.gmra.mxu3 %vm680_vm15, %v2152_v40 }
 0x207   :  { %1633 = vmatpush.xpose.msk.msra.mxu3 %vm680_vm15, %v925_v32 }
 0x209   :  { %v1674_v50 = vpop.permute.xlu2 %1673 }
 0x20a   :  { %v890_v16 = vpop.permute.xlu1 %889  ;;  %v1684_v52 = vpop.permute.xlu0 %1683  ;;  %v1676_v53 = vunpack.i.h.bf16 %v1674_v50  ;;  %v1675_v54 = vunpack.i.l.bf16 %v1674_v50 }
 0x20b   :  { %1629 = vmatpush.xpose.msk.msrb.mxu2 %vm680_vm15, %v890_v16  ;;  %v1686_v14 = vunpack.i.h.bf16 %v1684_v52  ;;  %v1685_v55 = vunpack.i.l.bf16 %v1684_v52 }
 0x20d   :  { %1628 = vmatmul.msk.f32.gmra.mxu1 %vm680_vm15, %v2146_v8 }
 0x20e   :  { %1620 = vmatmul.msk.f32.gmra.mxu3 %vm680_vm15, %v2137_v5 }
 0x20f   :  { %1630 = vmatpush.xpose.msk.msrb.mxu2 %vm680_vm15, %v888_v44 }
 0x212   :  { %v923_v36 = vpop.permute.xlu1 %922  ;;  %1631 = vmatmul.msk.f32.vlgmr.msrb.gmra.mxu2 %vm680_vm15, %v2122_v1 }
 0x213   :  { %1302 = vmatpush.msra.mxu2 %v1676_v53  ;;  %1634 = vmatpush.xpose.msk.msra.mxu3 %vm680_vm15, %v923_v36 }
 0x215   :  { %1303 = vmatpush.msra.mxu2 %v1686_v14 }
 0x216   :  { %1635 = vmatmul.msk.f32.vlgmr.msra.gmra.mxu3 %vm680_vm15, %v2174_v35 }
 0x217   :  { %1331 = vmatpush.msrb.mxu3 %v1675_v54 }
 0x219   :  { %1332 = vmatpush.msrb.mxu3 %v1685_v55  ;;  %v706_v56 = vpop.f32.mrf.mxu2 }
 0x21a   :  { %v820_v58 = vpop.permute.xlu1 %819  ;;  %1632 = vmatmul.msk.f32.gmra.mxu2 %vm680_vm15, %v2144_v51  ;;  %v958_v59 = vsel %vm957_vm4, %v706_v56, -inf }
 0x21b   :  { %1621 = vmatpush.xpose.msk.msrb.mxu0 %vm680_vm15, %v820_v58  ;;  %959 = vmax.xlane.f32.xlu0 %v958_v59  ;;  %v1687_v59 = vpack.i.bf16 %v2124_v2, %v2102_v0 }
 0x21e   :  { %1636 = vmatmul.msk.f32.gmra.mxu3 %vm680_vm15, %v2124_v2 }
 0x21f   :  { %1622 = vmatpush.xpose.msk.msrb.mxu0 %vm680_vm15, %v818_v49 }
 0x221   :  { %v709_v5 = vpop.f32.mrf.mxu2 }
 0x222   :  { %v1679_v60 = vpop.permute.xlu1 %1678  ;;  %1623 = vmatmul.msk.f32.vlgmr.msrb.gmra.mxu0 %vm680_vm15, %v2142_v39  ;;  %v961_v7 = vsel %vm957_vm4, %v709_v5, -inf }
 0x223   :  { %v1681_v61 = vunpack.i.h.bf16 %v1679_v60  ;;  %v1680_v62 = vunpack.i.l.bf16 %v1679_v60 }
 0x225   :  { %1244 = vmatpush.msra.mxu0 %v1681_v61  ;;  %1273 = vmatpush.msra.mxu1 %v1680_v62  ;;  %v741_v3 = vpop.f32.mrf.mxu3  ;;  %v1692_v62 = vpack.i.bf16 %v2144_v51, %v2087_v57 }
 0x226   :  { %v964_v4 = vsel %vm957_vm4, %v741_v3, -inf }
 0x227   :  { %965 = vmax.xlane.f32.xlu1 %v964_v4 }
 0x22a   :  { %1624 = vmatmul.msk.f32.gmra.mxu0 %vm680_vm15, %v2164_v22 }
 0x22d   :  { %v744_v6 = vpop.f32.mrf.mxu3 }
 0x22e   :  { %v967_v33 = vsel %vm957_vm4, %v744_v6, -inf }
 0x22f   :  { %968 = vmax.xlane.f32.xlu2 %v967_v33  ;;  %962 = vmax.xlane.f32.xlu1 %v961_v7 }
 0x234   :  { %v2258_v20 = vpop.f32.mrf.mxu0 }
 0x26d   :  { %v2250_v11 = vpop.f32.mrf.mxu2 }
 0x26e   :  { %v970_v13 = vsel %vm957_vm4, %v2250_v11, -inf }
 0x275   :  { %v2264_v21 = vpop.f32.mrf.mxu2 }
 0x276   :  { %v973_v44 = vsel %vm957_vm4, %v2264_v21, -inf }
 0x278   :  { %v2266_v41 = vpop.f32.mrf.mxu0 }
 0x282   :  { %v2246_v9 = vpop.f32.mrf.mxu1 }
 0x283   :  { %v988_v10 = vsel %vm957_vm4, %v2246_v9, -inf }
 0x284   :  { %989 = vmax.xlane.f32.xlu0 %v988_v10 }
 0x289   :  { %v2252_v34 = vpop.f32.mrf.mxu3 }
 0x28a   :  { %v976_v40 = vsel %vm957_vm4, %v2252_v34, -inf  ;;  %v2260_v18 = vpop.f32.mrf.mxu1 }
 0x28b   :  { %977 = vmax.xlane.f32.xlu1 %v976_v40  ;;  %v991_v23 = vsel %vm957_vm4, %v2260_v18, -inf }
 0x28c   :  { %971 = vmax.xlane.f32.xlu0 %v970_v13 }
 0x28e   :  { %v960_v15 = vpop.xlane.xlu0 %959 }
 0x28f   :  { %v1006_v19 = vsub.f32 %v706_v56, %v960_v15 }
 0x291   :  { %v1022_v17 = vmul.f32 1.442695, %v1006_v19  ;;  %v2278_v29 = vpop.f32.mrf.mxu3 }
 0x292   :  { %v979_v49 = vsel %vm957_vm4, %v2278_v29, -inf }
 0x293   :  { %1718 = vpow2.f32 %v1022_v17  ;;  %992 = vmax.xlane.f32.xlu1 %v991_v23 }
 0x295   :  { %v2272_v24 = vpop.f32.mrf.mxu2 }
 0x296   :  { %v994_v45 = vsel %vm957_vm4, %v2272_v24, -inf }
 0x299   :  { %v2268_v63 = vpop.eup %1718  ;;  %v2288_v31 = vpop.f32.mrf.mxu3 }
 0x29a   :  { %v1054_v25 = vsel %vm957_vm4, %v2268_v63, 0.0  ;;  %v966_v12 = vpop.xlane.xlu1 %965  ;;  %v1000_v55 = vsel %vm957_vm4, %v2288_v31, -inf }
 0x29b   :  { %1055 = vadd.xlane.f32.xlu1 %v1054_v25  ;;  %v1008_v42 = vsub.f32 %v741_v3, %v966_v12 }
 0x29d   :  { %v1026_v46 = vmul.f32 1.442695, %v1008_v42  ;;  %v2312_v60 = vpop.f32.mrf.mxu2 }
 0x29e   :  { %v997_v61 = vsel %vm957_vm4, %v2312_v60, -inf }
 0x29f   :  { %v2274_v26 = vpop.f32.mrf.mxu0 }
 0x2a0   :  { %v982_v28 = vsel %vm957_vm4, %v2274_v26, -inf }
 0x2a1   :  { %983 = vmax.xlane.f32.xlu2 %v982_v28  ;;  %v2298_v52 = vpop.f32.mrf.mxu3 }
 0x2a2   :  { %v969_v37 = vpop.xlane.xlu2 %968  ;;  %v963_v16 = vpop.xlane.xlu1 %962  ;;  %v1003_v54 = vsel %vm957_vm4, %v2298_v52, -inf }
 0x2a3   :  { %v1009_v38 = vsub.f32 %v744_v6, %v969_v37  ;;  %995 = vmax.xlane.f32.xlu1 %v994_v45  ;;  %v1007_v53 = vsub.f32 %v709_v5, %v963_v16 }
 0x2a5   :  { %v1028_v30 = vmul.f32 1.442695, %v1009_v38  ;;  %v1024_v36 = vmul.f32 1.442695, %v1007_v53 }
 0x2a7   :  { %v2282_v43 = vpop.f32.mrf.mxu0  ;;  %1720 = vpow2.f32 %v1028_v30 }
 0x2a8   :  { %v985_v32 = vsel %vm957_vm4, %v2282_v43, -inf  ;;  %1722 = vpow2.f32 %v1026_v46 }
 0x2a9   :  { %974 = vmax.xlane.f32.xlu2 %v973_v44  ;;  %986 = vmax.xlane.f32.xlu0 %v985_v32  ;;  %1724 = vpow2.f32 %v1024_v36 }
 0x2ad   :  { %v2290_v47 = vpop.eup %1720 }
 0x2ae   :  { %v1063_v48 = vsel %vm957_vm4, %v2290_v47, 0.0  ;;  %v2296_v50 = vpop.eup %1722 }
 0x2af   :  { %v1060_v14 = vsel %vm957_vm4, %v2296_v50, 0.0  ;;  %v2306_v56 = vpop.eup %1724 }
 0x2b0   :  { %v1057_v58 = vsel %vm957_vm4, %v2306_v56, 0.0 }
 0x2b1   :  { %980 = vmax.xlane.f32.xlu2 %v979_v49  ;;  %1064 = vadd.xlane.f32.xlu0 %v1063_v48  ;;  %v1854_v49 = vmov 16.0  }
 0x2b9   :  { %1061 = vadd.xlane.f32.xlu2 %v1060_v14  ;;  %1004 = vmax.xlane.f32.xlu0 %v1003_v54 }
 0x2c1   :  { %1001 = vmax.xlane.f32.xlu2 %v1000_v55 }
 0x2c9   :  { %1058 = vadd.xlane.f32.xlu2 %v1057_v58 }
 0x2cd   :  { %1688 = vrot.lane.b32.xlu0 %v1687_v59, %s1853_s30 }
 0x2d1   :  { %998 = vmax.xlane.f32.xlu2 %v997_v61 }
 0x2e9   :  { %1693 = vrot.lane.b32.xlu2 %v1692_v62, %s1853_s30 }
 0x2f7   :  { %v990_v3 = vpop.xlane.xlu0 %989 }
 0x2f8   :  { %v1016_v4 = vsub.f32 %v2246_v9, %v990_v3 }
 0x2fa   :  { %v1042_v5 = vmul.f32 1.442695, %v1016_v4 }
 0x2fc   :  { %1726 = vpow2.f32 %v1042_v5 }
 0x2fe   :  { %v978_v6 = vpop.xlane.xlu1 %977 }
 0x2ff   :  { %v972_v9 = vpop.xlane.xlu0 %971  ;;  %v1012_v37 = vsub.f32 %v2252_v34, %v978_v6 }
 0x300   :  { %v1010_v15 = vsub.f32 %v2250_v11, %v972_v9 }
 0x301   :  { %v1034_v11 = vmul.f32 1.442695, %v1012_v37 }
 0x302   :  { %v2321_v0 = vpop.eup %1726  ;;  %v1030_v23 = vmul.f32 1.442695, %v1010_v15 }
 0x303   :  { %v1084_v2 = vsel %vm957_vm4, %v2321_v0, 0.0 }
 0x304   :  { %1085 = vadd.xlane.f32.xlu1 %v1084_v2 }
 0x306   :  { %v993_v33 = vpop.xlane.xlu1 %992 }
 0x307   :  { %v1017_v7 = vsub.f32 %v2260_v18, %v993_v33 }
 0x309   :  { %v1044_v10 = vmul.f32 1.442695, %v1017_v7 }
 0x30b   :  { %1728 = vpow2.f32 %v1044_v10 }
 0x30e   :  { %v1056_v17 = vpop.xlane.xlu1 %1055 }
 0x311   :  { %v2326_v57 = vpop.eup %1728 }
 0x312   :  { %v1087_v51 = vsel %vm957_vm4, %v2326_v57, 0.0 }
 0x313   :  { %1088 = vadd.xlane.f32.xlu2 %v1087_v51 }
 0x314   :  { %v984_v40 = vpop.xlane.xlu2 %983 }
 0x315   :  { %v1014_v13 = vsub.f32 %v2274_v26, %v984_v40 }
 0x316   :  { %v996_v26 = vpop.xlane.xlu1 %995 }
 0x317   :  { %v1038_v19 = vmul.f32 1.442695, %v1014_v13  ;;  %v1018_v34 = vsub.f32 %v2272_v24, %v996_v26 }
 0x319   :  { %1730 = vpow2.f32 %v1038_v19 }
 0x31a   :  { %1732 = vpow2.f32 %v1030_v23 }
 0x31c   :  { %v987_v25 = vpop.xlane.xlu0 %986  ;;  %v975_v18 = vpop.xlane.xlu2 %974 }
 0x31d   :  { %v1015_v28 = vsub.f32 %v2282_v43, %v987_v25  ;;  %v1011_v46 = vsub.f32 %v2264_v21, %v975_v18 }
 0x31f   :  { %v2334_v45 = vpop.eup %1730  ;;  %v1040_v38 = vmul.f32 1.442695, %v1015_v28  ;;  %v1032_v14 = vmul.f32 1.442695, %v1011_v46 }
 0x320   :  { %v1078_v12 = vsel %vm957_vm4, %v2334_v45, 0.0  ;;  %v2338_v44 = vpop.eup %1732 }
 0x321   :  { %1734 = vpow2.f32 %v1040_v38  ;;  %1079 = vadd.xlane.f32.xlu0 %v1078_v12  ;;  %v1066_v53 = vsel %vm957_vm4, %v2338_v44, 0.0 }
 0x322   :  { %1736 = vpow2.f32 %v1034_v11 }
 0x323   :  { %1738 = vrcp.f32 %v1854_v49 }
 0x324   :  { %v1065_v30 = vpop.xlane.xlu0 %1064  ;;  %v981_v42 = vpop.xlane.xlu2 %980 }
 0x325   :  { %v1013_v32 = vsub.f32 %v2278_v29, %v981_v42  ;;  %1740 = vrcp.f32 %v1065_v30  ;;  %v1046_v29 = vmul.f32 1.442695, %v1018_v34 }
 0x327   :  { %v2342_v43 = vpop.eup %1734  ;;  %v1036_v48 = vmul.f32 1.442695, %v1013_v32 }
 0x328   :  { %v1081_v16 = vsel %vm957_vm4, %v2342_v43, 0.0  ;;  %v2349_v24 = vpop.eup %1736 }
 0x329   :  { %1742 = vpow2.f32 %v1036_v48  ;;  %1082 = vadd.xlane.f32.xlu1 %v1081_v16  ;;  %1067 = vadd.xlane.f32.xlu0 %v1066_v53  ;;  %v1739_v21 = vpop.eup %1738  ;;  %v1072_v61 = vsel %vm957_vm4, %v2349_v24, 0.0 }
 0x32a   :  { %v1207_v4 = vmul.f32 16.0, %v1739_v21  ;;  %vm1211_vm8 = vweird.f32 %v1739_v21 }
 0x32b   :  { %v1741_v55 = vpop.eup %1740 }
 0x32c   :  { %v1005_v54 = vpop.xlane.xlu0 %1004  ;;  %v1062_v36 = vpop.xlane.xlu2 %1061  ;;  %v1121_v3 = vmul.f32 %v1741_v55, %v2290_v47  ;;  %v1208_v40 = vsub.f32 1.0, %v1207_v4 }
 0x32d   :  { %1744 = vrcp.f32 %v1062_v36  ;;  %v1021_v59 = vsub.f32 %v2298_v52, %v1005_v54 }
 0x32e   :  { %1746 = vpow2.f32 %v1046_v29  ;;  %v1144_v51 = vsel %vm957_vm4, %v1121_v3, 0.0 }
 0x32f   :  { %v2351_v58 = vpop.eup %1742  ;;  %1748 = vpow2.f32 %v1032_v14  ;;  %v1052_v6 = vmul.f32 1.442695, %v1021_v59 }
 0x330   :  { %v1075_v62 = vsel %vm957_vm4, %v2351_v58, 0.0 }
 0x331   :  { %1073 = vadd.xlane.f32.xlu1 %v1072_v61  ;;  %1076 = vadd.xlane.f32.xlu2 %v1075_v62  ;;  %1750 = vpow2.f32 %v1052_v6 }
 0x332   :  { %1752 = vrcp.f32 %v1056_v17 }
 0x333   :  { %v1745_v5 = vpop.eup %1744 }
 0x334   :  { %v2359_v2 = vpop.eup %1746  ;;  %v1120_v33 = vmul.f32 %v1745_v5, %v2296_v50  ;;  %v1002_v7 = vpop.xlane.xlu2 %1001 }
 0x335   :  { %v2362_v10 = vpop.eup %1748  ;;  %v1020_v52 = vsub.f32 %v2288_v31, %v1002_v7  ;;  %v1090_v50 = vsel %vm957_vm4, %v2359_v2, 0.0  ;;  %v1209_v31 = vmul.f32 %v1739_v21, %v1208_v40 }
 0x336   :  { %v1143_v9 = vsel %vm957_vm4, %v1120_v33, 0.0  ;;  %v1069_v15 = vsel %vm957_vm4, %v2362_v10, 0.0 }
 0x337   :  { %v1145_v13 = vadd.f32 %v1144_v51, %v1143_v9  ;;  %v1050_v47 = vmul.f32 1.442695, %v1020_v52  ;;  %v2371_v18 = vpop.eup %1750  ;;  %v1210_v38 = vadd.f32 %v1739_v21, %v1209_v31  ;;  %v1697_v9 = vpack.i.bf16 %v2122_v1, %v2174_v35 }
 0x338   :  { %v1753_v37 = vpop.eup %1752  ;;  %v1099_v42 = vsel %vm957_vm4, %v2371_v18, 0.0 }
 0x339   :  { %v1146_v19 = vrot.slane %v1145_v13, 4  ;;  %1754 = vpow2.f32 %v1050_v47  ;;  %1070 = vadd.xlane.f32.xlu1 %v1069_v15  ;;  %1091 = vadd.xlane.f32.xlu2 %v1090_v50  ;;  %v1118_v46 = vmul.f32 %v1753_v37, %v2268_v63  ;;  %v2380_v48 = vsel %vm1211_vm8, %v1739_v21, %v1210_v38 }
 0x33b   :  { %v1147_v23 = vadd.f32 %v1146_v19, %v1145_v13  ;;  %v1134_v36 = vsel %vm957_vm4, %v1118_v46, 0.0 }
 0x33c   :  { %v1059_v25 = vpop.xlane.xlu2 %1058 }
 0x33d   :  { %v1148_v28 = vrot.slane %v1147_v23, 2  ;;  %1756 = vrcp.f32 %v1059_v25 }
 0x33f   :  { %v2373_v17 = vpop.eup %1754  ;;  %v1149_v12 = vadd.f32 %v1148_v28, %v1147_v23  ;;  %v1689_v11 = vpop.permute.xlu0 %1688 }
 0x340   :  { %v1691_v26 = vunpack.i.h.bf16 %v1689_v11  ;;  %v1690_v30 = vunpack.i.l.bf16 %v1689_v11  ;;  %v1096_v32 = vsel %vm957_vm4, %v2373_v17, 0.0 }
 0x341   :  { %1100 = vadd.xlane.f32.xlu1 %v1099_v42  ;;  %1097 = vadd.xlane.f32.xlu0 %v1096_v32  ;;  %v1150_v34 = vrot.slane %v1149_v12, 1 }
 0x342   :  { %1274 = vmatpush.msra.mxu1 %v1690_v30  ;;  %1447 = vmatpush.msra.mxu3 %v1691_v26 }
 0x343   :  { %v1757_v49 = vpop.eup %1756  ;;  %v1151_v16 = vadd.f32 %v1150_v34, %v1149_v12 }
 0x344   :  { %v1119_v53 = vmul.f32 %v1757_v49, %v2306_v56  ;;  %v999_v29 = vpop.xlane.xlu2 %998 }
 0x345   :  { %v1019_v14 = vsub.f32 %v2312_v60, %v999_v29  ;;  %v1214_v54 = vmul.f32 %v2380_v48, %v1151_v16  ;;  %v1707_v60 = vpack.i.bf16 %v2142_v39, %v2183_v27  ;;  %v1702_v39 = vpack.i.bf16 %v2164_v22, %v2146_v8 }
 0x346   :  { %v1135_v55 = vsel %vm957_vm4, %v1119_v53, 0.0 }
 0x347   :  { %v1136_v59 = vadd.f32 %v1135_v55, %v1134_v36  ;;  %v1048_v61 = vmul.f32 1.442695, %v1019_v14  ;;  %1638 = vmatmul.msk.f32.vlgmr.msra.gmra.mxu1 %vm957_vm4, %v1214_v54 }
 0x349   :  { %v1137_v63 = vrot.slane %v1136_v59, 4  ;;  %1758 = vpow2.f32 %v1048_v61 }
 0x34b   :  { %v1138_v21 = vadd.f32 %v1137_v63, %v1136_v59 }
 0x34c   :  { %v1694_v62 = vpop.permute.xlu2 %1693 }
 0x34d   :  { %v1139_v3 = vrot.slane %v1138_v21, 2  ;;  %v1696_v4 = vunpack.i.h.bf16 %v1694_v62  ;;  %v1695_v56 = vunpack.i.l.bf16 %v1694_v62 }
 0x34f   :  { %v2388_v5 = vpop.eup %1758  ;;  %v1140_v6 = vadd.f32 %v1139_v3, %v1138_v21  ;;  %1245 = vmatpush.msra.mxu0 %v1695_v56  ;;  %1418 = vmatpush.msrb.mxu2 %v1696_v4 }
 0x350   :  { %v1093_v33 = vsel %vm957_vm4, %v2388_v5, 0.0 }
 0x351   :  { %1708 = vrot.lane.b32.xlu2 %v1707_v60, %s1853_s30  ;;  %1094 = vadd.xlane.f32.xlu0 %v1093_v33  ;;  %v1141_v7 = vrot.slane %v1140_v6, 1 }
 0x353   :  { %v1142_v52 = vadd.f32 %v1141_v7, %v1140_v6 }
 0x355   :  { %v1213_v51 = vmul.f32 %v2380_v48, %v1142_v52 }
 0x357   :  { %1637 = vmatmul.msk.f32.vlgmr.msra.gmra.mxu0 %vm957_vm4, %v1213_v51 }
 0x35a   :  { %1698 = vrot.lane.b32.xlu1 %v1697_v9, %s1853_s30 }
 0x365   :  { %1703 = vrot.lane.b32.xlu0 %v1702_v39, %s1853_s30 }
 0x377   :  { %v1086_v27 = vpop.xlane.xlu1 %1085 }
 0x386   :  { %v1089_v40 = vpop.xlane.xlu2 %1088 }
 0x394   :  { %v1080_v13 = vpop.xlane.xlu0 %1079 }
 0x39c   :  { %v1083_v47 = vpop.xlane.xlu1 %1082  ;;  %v1068_v19 = vpop.xlane.xlu0 %1067 }
 0x3a4   :  { %v1074_v15 = vpop.xlane.xlu1 %1073  ;;  %v1077_v50 = vpop.xlane.xlu2 %1076 }
 0x3a5   :  { %1760 = vrcp.f32 %v1074_v15 }
 0x3a6   :  { %1762 = vrcp.f32 %v1077_v50 }
 0x3a7   :  { %1764 = vrcp.f32 %v1068_v19 }
 0x3ab   :  { %v1761_v31 = vpop.eup %1760 }
 0x3ac   :  { %v1763_v23 = vpop.eup %1762  ;;  %v1124_v1 = vmul.f32 %v1761_v31, %v2349_v24  ;;  %v1071_v35 = vpop.xlane.xlu1 %1070 }
 0x3ad   :  { %v1125_v25 = vmul.f32 %v1763_v23, %v2351_v58  ;;  %1766 = vrcp.f32 %v1071_v35  ;;  %v1765_v22 = vpop.eup %1764  ;;  %v1092_v6 = vpop.xlane.xlu2 %1091 }
 0x3ae   :  { %1768 = vrcp.f32 %v1089_v40  ;;  %v1161_v8 = vsel %vm957_vm4, %v1124_v1, 0.0  ;;  %v1122_v38 = vmul.f32 %v1765_v22, %v2338_v44 }
 0x3af   :  { %1770 = vrcp.f32 %v1083_v47  ;;  %v1162_v28 = vsel %vm957_vm4, %v1125_v25, 0.0 }
 0x3b0   :  { %1772 = vrcp.f32 %v1086_v27  ;;  %v1163_v37 = vadd.f32 %v1162_v28, %v1161_v8  ;;  %v1152_v46 = vsel %vm957_vm4, %v1122_v38, 0.0 }
 0x3b1   :  { %1774 = vrcp.f32 %v1080_v13 }
 0x3b2   :  { %v1164_v12 = vrot.slane %v1163_v37, 4 }
 0x3b3   :  { %v1767_v11 = vpop.eup %1766 }
 0x3b4   :  { %v1769_v26 = vpop.eup %1768  ;;  %v1165_v24 = vadd.f32 %v1164_v12, %v1163_v37  ;;  %v1123_v30 = vmul.f32 %v1767_v11, %v2362_v10  ;;  %v1101_v58 = vpop.xlane.xlu1 %1100 }
 0x3b5   :  { %v1098_v42 = vpop.xlane.xlu0 %1097  ;;  %v1771_v32 = vpop.eup %1770  ;;  %1776 = vrcp.f32 %v1101_v58  ;;  %v1129_v44 = vmul.f32 %v1769_v26, %v2326_v57 }
 0x3b6   :  { %v1773_v34 = vpop.eup %1772  ;;  %v1166_v49 = vrot.slane %v1165_v24, 2  ;;  %v1153_v16 = vsel %vm957_vm4, %v1123_v30, 0.0  ;;  %1778 = vrcp.f32 %v1098_v42  ;;  %v1127_v14 = vmul.f32 %v1771_v32, %v2342_v43 }
 0x3b7   :  { %v1775_v53 = vpop.eup %1774  ;;  %v1154_v29 = vadd.f32 %v1153_v16, %v1152_v46  ;;  %v1128_v10 = vmul.f32 %v1773_v34, %v2321_v0  ;;  %v1180_v62 = vsel %vm957_vm4, %v1129_v44, 0.0  ;;  %1780 = vrcp.f32 %v1092_v6 }
 0x3b8   :  { %v1167_v54 = vadd.f32 %v1166_v49, %v1165_v24  ;;  %v1126_v55 = vmul.f32 %v1775_v53, %v2334_v45  ;;  %v1171_v3 = vsel %vm957_vm4, %v1127_v14, 0.0 }
 0x3b9   :  { %v1155_v36 = vrot.slane %v1154_v29, 4  ;;  %v1179_v60 = vsel %vm957_vm4, %v1128_v10, 0.0 }
 0x3ba   :  { %v1168_v59 = vrot.slane %v1167_v54, 1  ;;  %v1170_v0 = vsel %vm957_vm4, %v1126_v55, 0.0  ;;  %v1181_v7 = vadd.f32 %v1180_v62, %v1179_v60 }
 0x3bb   :  { %v1777_v61 = vpop.eup %1776  ;;  %v1156_v63 = vadd.f32 %v1155_v36, %v1154_v29  ;;  %v1172_v52 = vadd.f32 %v1171_v3, %v1170_v0  ;;  %v1709_v29 = vpop.permute.xlu2 %1708 }
 0x3bc   :  { %v1779_v21 = vpop.eup %1778  ;;  %v1133_v4 = vmul.f32 %v1777_v61, %v2371_v18  ;;  %v1169_v56 = vadd.f32 %v1168_v59, %v1167_v54  ;;  %v1182_v27 = vrot.slane %v1181_v7, 4  ;;  %v1711_v61 = vunpack.i.h.bf16 %v1709_v29 }
 0x3bd   :  { %v1157_v57 = vrot.slane %v1156_v63, 2  ;;  %v1132_v43 = vmul.f32 %v1779_v21, %v2373_v17  ;;  %v1173_v40 = vrot.slane %v1172_v52, 4  ;;  %v1781_v31 = vpop.eup %1780 }
 0x3be   :  { %v1198_v45 = vsel %vm957_vm4, %v1133_v4, 0.0  ;;  %v1216_v33 = vmul.f32 %v2380_v48, %v1169_v56  ;;  %v1183_v23 = vadd.f32 %v1182_v27, %v1181_v7  ;;  %v1130_v25 = vmul.f32 %v1781_v31, %v2359_v2  ;;  %v580_v27 = vld [vmem:[#allocation3 + $0x88] sm:$0xff] }
 0x3bf   :  { %v1158_v51 = vadd.f32 %v1157_v57, %v1156_v63  ;;  %v1197_v9 = vsel %vm957_vm4, %v1132_v43, 0.0  ;;  %v1174_v1 = vadd.f32 %v1173_v40, %v1172_v52  ;;  %v1710_v63 = vunpack.i.l.bf16 %v1709_v29  ;;  %v579_v40 = vld [vmem:[#allocation3 + $0x80] sm:$0xff] }
 0x3c0   :  { %v1199_v39 = vadd.f32 %v1198_v45, %v1197_v9  ;;  %1640 = vmatmul.msk.f32.vlgmr.msrb.gmra.mxu3 %vm957_vm4, %v1216_v33  ;;  %v1184_v28 = vrot.slane %v1183_v23, 2  ;;  %v1188_v30 = vsel %vm957_vm4, %v1130_v25, 0.0  ;;  %v1513_v25 = vld [vmem:[#allocation3 + $0xd0] sm:$0xff] }
 0x3c1   :  { %v1159_v18 = vrot.slane %v1158_v51, 1  ;;  %v1175_v37 = vrot.slane %v1174_v1, 2 }
 0x3c2   :  { %v1200_v17 = vrot.slane %v1199_v39, 4  ;;  %v1185_v32 = vadd.f32 %v1184_v28, %v1183_v23  ;;  %v1510_v28 = vld [vmem:[#allocation3 + $0xb8] sm:$0xff] }
 0x3c3   :  { %v1160_v13 = vadd.f32 %v1159_v18, %v1158_v51  ;;  %v1176_v34 = vadd.f32 %v1175_v37, %v1174_v1  ;;  %v582_v18 = vld [vmem:[#allocation3 + $0x98] sm:$0xff]  ;;  %v1509_v37 = vld [vmem:[#allocation3 + $0xb0] sm:$0xff] }
 0x3c4   :  { %v1201_v47 = vadd.f32 %v1200_v17, %v1199_v39  ;;  %v1095_v15 = vpop.xlane.xlu0 %1094  ;;  %v1186_v16 = vrot.slane %v1185_v32, 1  ;;  %v1276_v0 = vpop.f32.mrf.mxu1  ;;  %v581_v17 = vld [vmem:[#allocation3 + $0x90] sm:$0xff] }
 0x3c5   :  { %1782 = vrcp.f32 %v1095_v15  ;;  %v1215_v50 = vmul.f32 %v2380_v48, %v1160_v13  ;;  %v1455_v13 = vrot.slane %v1276_v0, 7 }
 0x3c6   :  { %v1202_v19 = vrot.slane %v1201_v47, 2  ;;  %v1187_v36 = vadd.f32 %v1186_v16, %v1185_v32 }
 0x3c7   :  { %1639 = vmatmul.msk.f32.vlgmr.msra.gmra.mxu2 %vm957_vm4, %v1215_v50 }
 0x3c8   :  { %v1203_v35 = vadd.f32 %v1202_v19, %v1201_v47  ;;  %v1218_v62 = vmul.f32 %v2380_v48, %v1187_v36 }
 0x3ca   :  { %v1204_v8 = vrot.slane %v1203_v35, 1 }
 0x3cb   :  { %v1783_v22 = vpop.eup %1782 }
 0x3cc   :  { %v1131_v38 = vmul.f32 %v1783_v22, %v2388_v5  ;;  %v1699_v12 = vpop.permute.xlu1 %1698  ;;  %v1205_v11 = vadd.f32 %v1204_v8, %v1203_v35  ;;  %v1177_v5 = vrot.slane %v1176_v34, 1  ;;  %v1514_v35 = vld [vmem:[#allocation3 + $0xd8] sm:$0xff]  ;;  %v1512_v8 = vld [vmem:[#allocation3 + $0xc8] sm:$0xff]  ;;  %v1511_v22 = vld [vmem:[#allocation3 + $0xc0] sm:$0xff] }
 0x3cd   :  { %v1701_v26 = vunpack.i.h.bf16 %v1699_v12  ;;  %v1700_v24 = vunpack.i.l.bf16 %v1699_v12  ;;  %v1716_v12 = vld [vmem:[#allocation3 + $0x79] ss:$0 sm:$0xff] }
 0x3ce   :  { %v1189_v58 = vsel %vm957_vm4, %v1131_v38, 0.0  ;;  %v1220_v42 = vmul.f32 %v2380_v48, %v1205_v11  ;;  %v1178_v54 = vadd.f32 %v1177_v5, %v1176_v34  ;;  %v1508_v38 = vld [vmem:[#allocation3 + $0xa8] sm:$0xff] }
 0x3cf   :  { %v1190_v46 = vadd.f32 %v1189_v58, %v1188_v30  ;;  %1419 = vmatpush.msrb.mxu2 %v1701_v26  ;;  %1448 = vmatpush.msra.mxu3 %v1700_v24  ;;  %v1715_v24 = vld [vmem:[#allocation3 + $0x6] ss:$0 sm:$0xff] }
 0x3d0   :  { %1644 = vmatmul.msk.f32.vlgmr.msra.gmra.mxu3 %vm957_vm4, %v1220_v42  ;;  %v1217_v21 = vmul.f32 %v2380_v48, %v1178_v54  ;;  %v475_v30 = vadd.f32 %v1715_v24, %v2266_v41  ;;  %v472_v42 = vadd.f32 %v1715_v24, %v2258_v20 }
 0x3d1   :  { %v1191_v2 = vrot.slane %v1190_v46, 4 }
 0x3d2   :  { %v478_v58 = vmax.f32 %v475_v30, 0.0  ;;  %v477_v34 = vmax.f32 %v472_v42, 0.0 }
 0x3d3   :  { %v1192_v49 = vadd.f32 %v1191_v2, %v1190_v46 }
 0x3d4   :  { %v1247_v6 = vpop.f32.mrf.mxu0  ;;  %v484_v32 = vrot.slane %v478_v58, 2  ;;  %v485_v46 = vrot.slane %v478_v58, 4  ;;  %v1597_v5 = vrot.slane %v478_v58, 9 }
 0x3d5   :  { %v1193_v53 = vrot.slane %v1192_v49, 2  ;;  %v1456_v15 = vsel %vm353_vm6, %v1455_v13, %v1247_v6 }
 0x3d6   :  { %v1598_v2 = vrot.slane %v484_v32, 9  ;;  %v1599_v16 = vrot.slane %v485_v46, 9  ;;  %v521_v54 = vmax.f32 %v478_v58, %v1597_v5 }
 0x3d7   :  { %v1194_v44 = vadd.f32 %v1193_v53, %v1192_v49  ;;  %v1704_v14 = vpop.permute.xlu0 %1703  ;;  %v481_v49 = vrot.slane %v477_v34, 2  ;;  %v486_v53 = vrot.slane %v478_v58, 6 }
 0x3d8   :  { %v1706_v10 = vunpack.i.h.bf16 %v1704_v14  ;;  %v1705_v55 = vunpack.i.l.bf16 %v1704_v14  ;;  %v522_v29 = vmax.f32 %v484_v32, %v1598_v2  ;;  %v523_v36 = vmax.f32 %v485_v46, %v1599_v16 }
 0x3d9   :  { %v1195_v59 = vrot.slane %v1194_v44, 1  ;;  %v1594_v14 = vrot.slane %v481_v49, 9  ;;  %v537_v20 = vperm.slane %v521_v54, 0 }
 0x3da   :  { %1360 = vmatpush.msrb.mxu0 %v1706_v10  ;;  %1389 = vmatpush.msrb.mxu1 %v1705_v55  ;;  %v1593_v10 = vrot.slane %v477_v34, 9  ;;  %v1600_v55 = vrot.slane %v486_v53, 9 }
 0x3db   :  { %v1196_v3 = vadd.f32 %v1195_v59, %v1194_v44  ;;  %v482_v44 = vrot.slane %v477_v34, 4  ;;  %v538_v59 = vperm.slane %v522_v29, 0 }
 0x3dc   :  { %1361 = vmatpush.msrb.mxu0 %v1711_v61  ;;  %1390 = vmatpush.msrb.mxu1 %v1710_v63  ;;  %v483_v61 = vrot.slane %v477_v34, 6  ;;  %v518_v63 = vmax.f32 %v481_v49, %v1594_v14 }
 0x3dd   :  { %1641 = vmatmul.msk.f32.vlgmr.msrb.gmra.mxu0 %vm957_vm4, %v1217_v21  ;;  %1642 = vmatmul.msk.f32.vlgmr.msrb.gmra.mxu1 %vm957_vm4, %v1218_v62  ;;  %v1219_v4 = vmul.f32 %v2380_v48, %v1196_v3  ;;  %v1595_v41 = vrot.slane %v482_v44, 9  ;;  %v539_v21 = vperm.slane %v523_v36, 0  ;;  %v517_v62 = vmax.f32 %v477_v34, %v1593_v10  ;;  %v1717_v34 = vld [vmem:[#allocation3 + $0x7a] ss:$0 sm:$0xff] }
 0x3de   :  { %1499 = vmatpush.msra.mxu0 %v582_v18  ;;  %1539 = vmatpush.msra.mxu1 %v1514_v35  ;;  %v524_v3 = vmax.f32 %v486_v53, %v1600_v55 }
 0x3df   :  { %1643 = vmatmul.msk.f32.vlgmr.msrb.gmra.mxu2 %vm957_vm4, %v1219_v4  ;;  %v544_v4 = vsel %vm353_vm6, %v538_v59, %v537_v20  ;;  %v533_v0 = vperm.slane %v517_v62, 0 }
 0x3e0   :  { %1500 = vmatpush.msra.mxu0 %v581_v17  ;;  %1540 = vmatpush.msra.mxu1 %v1513_v25  ;;  %v540_v6 = vperm.slane %v524_v3, 0 }
 0x3e2   :  { %1501 = vmatpush.msra.mxu0 %v580_v27  ;;  %1541 = vmatpush.msra.mxu1 %v1512_v8  ;;  %v1507_v27 = vld [vmem:[#allocation3 + $0xa0] sm:$0xff] }
 0x3e4   :  { %1502 = vmatpush.msra.mxu0 %v579_v40  ;;  %1542 = vmatpush.msra.mxu1 %v1511_v22 }
 0x3e6   :  { %1543 = vmatpush.msra.mxu1 %v1510_v28 }
 0x3e8   :  { %1544 = vmatpush.msra.mxu1 %v1509_v37 }
 0x3ea   :  { %1545 = vmatpush.msra.mxu1 %v1508_v38 }
 0x3ec   :  { %1546 = vmatpush.msra.mxu1 %v1507_v27 }
 0x443   :  { %v1334_v56 = vpop.f32.mrf.mxu3 }
 0x444   :  { %v1460_v57 = vrot.slane %v1334_v56, 7  ;;  %v519_v56 = vmax.f32 %v482_v44, %v1595_v41 }
 0x44a   :  { %v1305_v43 = vpop.f32.mrf.mxu2 }
 0x44b   :  { %v1461_v60 = vsel %vm353_vm6, %v1460_v57, %v1305_v43  ;;  %v1596_v57 = vrot.slane %v483_v61, 9  ;;  %v534_v43 = vperm.slane %v518_v63, 0 }
 0x44c   :  { %1462 = vrot.lane.b32.xlu1 %v1461_v60, %s1842_s15  ;;  %v545_v60 = vsel %vm355_vm7, %v539_v21, %v544_v4 }
 0x453   :  { %v1450_v51 = vpop.f32.mrf.mxu3 }
 0x454   :  { %v1474_v48 = vrot.slane %v1450_v51, 7 }
 0x45a   :  { %v1392_v45 = vpop.f32.mrf.mxu1  ;;  %v1363_v7 = vpop.f32.mrf.mxu0 }
 0x45b   :  { %v1467_v33 = vrot.slane %v1392_v45, 7  ;;  %v535_v45 = vperm.slane %v519_v56, 0 }
 0x45d   :  { %v1468_v52 = vsel %vm353_vm6, %v1467_v33, %v1363_v7  ;;  %v520_v33 = vmax.f32 %v483_v61, %v1596_v57  ;;  %v541_v7 = vsel %vm353_vm6, %v534_v43, %v533_v0 }
 0x45e   :  { %1469 = vrot.lane.b32.xlu0 %v1468_v52, %s1849_s26  ;;  %v546_v52 = vsel %vm357_vm9, %v540_v6, %v545_v60  ;;  %v542_v51 = vsel %vm355_vm7, %v535_v45, %v541_v7 }
 0x462   :  { %v1421_v9 = vpop.f32.mrf.mxu2 }
 0x463   :  { %v1475_v39 = vsel %vm353_vm6, %v1474_v48, %v1421_v9  ;;  %v557_v48 = vsel %vm549_vm11, %v546_v52, 0.0  ;;  %v536_v9 = vperm.slane %v520_v33, 0 }
 0x464   :  { %1476 = vrot.lane.b32.xlu2 %v1475_v39, %s1855_s3  ;;  %v1856_v39 = vmov 4.0   ;;  %v558_v17 = vrot.slane %v557_v48, 4 }
 0x465   :  { %1784 = vrcp.f32 %v1856_v39  ;;  %v543_v18 = vsel %vm357_vm9, %v536_v9, %v542_v51  ;;  %vm1527_vm9 = vcmask 523264  }
 0x466   :  { %v550_v40 = vsel %vm549_vm11, %v543_v18, 0.0 }
 0x46b   :  { %v1785_v13 = vpop.eup %1784 }
 0x46c   :  { %vm569_vm7 = vweird.f32 %v1785_v13 }
 0x4be   :  { %v1463_v47 = vpop.permute.xlu1 %1462  ;;  %v1477_v31 = vpop.permute.xlu2 %1476 }
 0x4bf   :  { %v1479_v50 = vsel %vm680_vm15, %v1456_v15, %v1463_v47  ;;  %v559_v47 = vadd.f32 %v558_v17, %v557_v48  ;;  %v551_v15 = vrot.slane %v550_v40, 4 }
 0x4d0   :  { %v1470_v19 = vpop.permute.xlu0 %1469 }
 0x4d1   :  { %v1480_v23 = vsel %vm957_vm4, %v1479_v50, %v1470_v19  ;;  %v565_v50 = vmul.f32 4.0, %v1785_v13  ;;  %v560_v19 = vrot.slane %v559_v47, 2 }
 0x4d2   :  { %v1482_v1 = vsel %vm1481_vm10, %v1480_v23, %v1477_v31  ;;  %v552_v31 = vadd.f32 %v551_v15, %v550_v40 }
 0x4d3   :  { %1645 = vmatmul.msk.f32.vlgmr.msra.gmra.mxu0 %vm606_vm5, %v1482_v1  ;;  %v566_v23 = vsub.f32 1.0, %v565_v50  ;;  %v561_v1 = vadd.f32 %v560_v19, %v559_v47 }
 0x4d4   :  { %v553_v35 = vrot.slane %v552_v31, 2 }
 0x4d5   :  { %v567_v25 = vmul.f32 %v1785_v13, %v566_v23  ;;  %v562_v8 = vrot.slane %v561_v1, 1 }
 0x4d6   :  { %v554_v22 = vadd.f32 %v553_v35, %v552_v31 }
 0x4d7   :  { %v568_v28 = vadd.f32 %v1785_v13, %v567_v25  ;;  %v563_v37 = vadd.f32 %v562_v8, %v561_v1 }
 0x4d8   :  { %v555_v38 = vrot.slane %v554_v22, 1 }
 0x550   :  { %v1504_v11 = vpop.f32.mrf.mxu0 }
 0x551   :  { %v1505_v26 = vadd.f32 %v1716_v12, %v1504_v11  ;;  %v570_v12 = vsel %vm569_vm7, %v1785_v13, %v568_v28 }
 0x552   :  { %v572_v11 = vmul.f32 %v570_v12, %v563_v37 }
 0x553   :  { %1522 = vrot.lane.b32.xlu1 %v1505_v26, %s1851_s28  ;;  %v556_v26 = vadd.f32 %v555_v38, %v554_v22 }
 0x554   :  { %v1518_v24 = vrot.slane %v572_v11, 7 }
 0x555   :  { %v571_v30 = vmul.f32 %v570_v12, %v556_v26 }
 0x557   :  { %v1519_v58 = vsel %vm353_vm6, %v1518_v24, %v571_v30 }
 0x5c5   :  { %v1523_v42 = vpop.permute.xlu1 %1522 }
 0x5c6   :  { %v1525_v32 = vsel %vm606_vm5, %v1519_v58, %v1523_v42 }
 0x5c7   :  { %1646 = vmatmul.msk.f32.vlgmr.msra.gmra.mxu1 %vm1527_vm9, %v1525_v32 }
 0x644   :  { %v1548_v46 = vpop.f32.mrf.mxu1 }
 0x645   :  { %v1549_v2 = vadd.f32 %v1717_v34, %v1548_v46 }
 0x647   :  { %v1551_v49 = vmul.f32 0.5, %v1549_v2 }
 0x649   :  { %1786 = vtanh.f32 %v1551_v49 }
 0x64f   :  { %v1787_v5 = vpop.eup %1786 }
 0x650   :  { %v1553_v16 = vadd.f32 1.0, %v1787_v5 }
 0x652   :  { %v1554_v53 = vmul.f32 0.5, %v1553_v16 }
 0x654   :  { %v1555_v29 = vmul.f32 %v1554_v53, %v1525_v32 }
 0x656   :  { %1557 = vst.msk [vmem:[#allocation6] sm:$0x3] %vm1556_vm12, %v1555_v29 }
 0x657   :  { %1568 = dma.vmem_to_hbm [thread:$0]  %s1564_s5, 32, %s1566_s8, [#allocation5]  }
 0x658   :  { %1838 = dma.done.wait [#allocation5], 32  }
 0x659   :  { %1839 = vsyncadd [#allocation5], 4294967264 }
 0x65a   :  { %1573 = vsyncpa [#allocation4], 1 }
 0x65b   :  { %1574 = vsyncpa [#allocation5], 1 }

</bundles_post_ra>
